<compile_context>
chip_gen: v5e
topology: v5e:2x2
jax: 0.10.0
libtpu: 0.0.40
codegen_flags: <defaults>
</compile_context>

<pallas_src>
from typing import NamedTuple

import numpy as np
import jax
import jax.numpy as jnp
from jax.experimental import pallas as pl
from jax.experimental.pallas import tpu as pltpu

NUM_RELATIONS = 20
LEAKY_SLOPE = 0.01
BN_EPS = 1e-5
LANE = 128
SUBLANE = 8


class UnpoolInfo(NamedTuple):
    edge_index: np.ndarray
    cluster: np.ndarray
    batch: np.ndarray
    new_edge_score: np.ndarray


def _round_up(v, m):
    return (v + m - 1) // m * m


def _bucket_nodes(n):
    # power-of-two bucketing (min 16) -> repeated pooling steps hit the same
    # compiled executable; also keeps bf16 sublane offsets (r*n_pad) aligned.
    return max(16, 1 << (max(int(n), 1) - 1).bit_length())


# ----------------------------------------------------------------------------
# Pallas kernel: full varRGCN stack, one grid step per layer.
#   h          : persistent f32 activation scratch (VMEM-resident across grid)
#   T = h @ W_cat[l]                (ONE matmul for all 20 relations)
#   S[r*N:(r+1)*N, :] = T[:, r*Cp:(r+1)*Cp]   (aligned vector copies, no MXU)
#   out = A_t @ S + h @ root[l] + bias[l]     (ONE K = R*N_pad matmul)
#   layers < last : out = leaky_relu(out * bn_scale + bn_shift)  (f32 epilogue)
#   last layer    : out -> o_ref (single HBM writeback)
# ----------------------------------------------------------------------------
def _rgcn_stack_kernel(a_ref, x_ref, w_ref, root_ref, b_ref, sc_ref, sh_ref,
                       o_ref, h_ref, s_ref):
    l = pl.program_id(0)
    last = pl.num_programs(0) - 1
    n_pad, c_pad = x_ref.shape
    num_rel = s_ref.shape[0] // n_pad

    @pl.when(l == 0)
    def _():
        h_ref[...] = x_ref[...]

    h16 = h_ref[...].astype(jnp.bfloat16)

    # (1) all relations' message transforms in a single MXU contraction.
    t = jnp.dot(h16, w_ref[...], preferred_element_type=jnp.float32)
    t = t.astype(jnp.bfloat16)

    # (2) re-lay relation lane-blocks of T into sublane blocks of S.
    #     Pure vld/vst copies (lane offsets multiples of 128, sublane offsets
    #     multiples of n_pad >= 16), no MXU fill/drain.
    for r in range(num_rel):
        s_ref[r * n_pad:(r + 1) * n_pad, :] = t[:, r * c_pad:(r + 1) * c_pad]

    # (3) one big-K adjacency contraction:  sum_r A_r @ (h @ W_r) == A_t @ S.
    out = jnp.dot(a_ref[...], s_ref[...], preferred_element_type=jnp.float32)
    out = out + jnp.dot(h16, root_ref[...], preferred_element_type=jnp.float32)
    out = out + b_ref[...]

    @pl.when(l < last)
    def _():
        # eval BatchNorm folded to scale/shift + LeakyReLU, in f32 (v5e-safe).
        y = out * sc_ref[...] + sh_ref[...]
        h_ref[...] = jnp.where(y > 0.0, y, LEAKY_SLOPE * y)
        # TODO(synk): nn.Dropout(p=0.1) assumed eval-mode (identity).

    @pl.when(l == last)
    def _():
        o_ref[...] = out


def rgcn_stack_forward(a_t, x_pad, w_cat, root, bias, scale, shift):
    n_pad, c_pad = x_pad.shape
    num_l = w_cat.shape[0]
    rn = a_t.shape[1]            # NUM_RELATIONS * n_pad
    rc = w_cat.shape[2]          # NUM_RELATIONS * c_pad

    flops = 2 * num_l * (n_pad * c_pad * rc          # h @ W_cat
                         + n_pad * rn * c_pad        # A_t @ S
                         + n_pad * c_pad * c_pad)    # h @ root
    bytes_accessed = int(
        a_t.size * a_t.dtype.itemsize + x_pad.size * 4
        + w_cat.size * w_cat.dtype.itemsize + root.size * root.dtype.itemsize
        + (bias.size + scale.size + shift.size) * 4 + n_pad * c_pad * 4)

    return pl.pallas_call(
        _rgcn_stack_kernel,
        out_shape=jax.ShapeDtypeStruct((n_pad, c_pad), jnp.float32),
        grid=(num_l,),
        in_specs=[
            pl.BlockSpec((n_pad, rn), lambda l: (0, 0)),              # A_t (resident)
            pl.BlockSpec((n_pad, c_pad), lambda l: (0, 0)),           # x   (resident)
            pl.BlockSpec((None, c_pad, rc), lambda l: (l, 0, 0)),     # W_cat[l]
            pl.BlockSpec((None, c_pad, c_pad), lambda l: (l, 0, 0)),  # root[l]
            pl.BlockSpec((None, 1, c_pad), lambda l: (l, 0, 0)),      # bias[l]
            pl.BlockSpec((None, 1, c_pad), lambda l: (l, 0, 0)),      # bn scale[l]
            pl.BlockSpec((None, 1, c_pad), lambda l: (l, 0, 0)),      # bn shift[l]
        ],
        out_specs=pl.BlockSpec((n_pad, c_pad), lambda l: (0, 0)),
        scratch_shapes=[
            pltpu.VMEM((n_pad, c_pad), jnp.float32),    # inter-layer activation
            pltpu.VMEM((rn, c_pad), jnp.bfloat16),      # stacked messages S
        ],
        compiler_params=pltpu.CompilerParams(
            dimension_semantics=("arbitrary",),
            vmem_limit_bytes=32 * 1024 * 1024),
        cost_estimate=pl.CostEstimate(flops=flops, transcendentals=0,
                                      bytes_accessed=bytes_accessed),
    )(a_t, x_pad, w_cat, root, bias, scale, shift)


# ----------------------------------------------------------------------------
# Operand preparation (lane padding, BN folding, relation-concatenated weights)
# NOTE: parameters are stored in [in, out] layout (already transposed relative
# to PyTorch's [out, in] nn.Linear state_dicts).
# ----------------------------------------------------------------------------
def build_rgcn_stacks(params, c_in, c_pad):
    num_l = len(params["rgcn"])
    rc = NUM_RELATIONS * c_pad
    w_cat = np.zeros((num_l, c_pad, rc), np.float32)
    root = np.zeros((num_l, c_pad, c_pad), np.float32)
    bias = np.zeros((num_l, 1, c_pad), np.float32)
    scale = np.zeros((num_l, 1, c_pad), np.float32)
    shift = np.zeros((num_l, 1, c_pad), np.float32)
    for l, p in enumerate(params["rgcn"]):
        w = np.asarray(p["weight"])                  # [R, c_in, c_out]
        c_out = w.shape[2]
        for r in range(NUM_RELATIONS):
            w_cat[l, :c_in, r * c_pad:r * c_pad + c_out] = w[r]
        root[l, :c_in, :c_out] = np.asarray(p["root"])
        bias[l, 0, :c_out] = np.asarray(p["bias"])
    for l, bn in enumerate(params["bn"]):            # layers 0 .. num_l-2
        sc = np.asarray(bn["gamma"]) / np.sqrt(np.asarray(bn["var"]) + BN_EPS)
        sh = np.asarray(bn["beta"]) - np.asarray(bn["mean"]) * sc
        scale[l, 0, :c_in] = sc
        shift[l, 0, :c_in] = sh
    return (jnp.asarray(w_cat, jnp.bfloat16),        # weights / adjacency bf16
            jnp.asarray(root, jnp.bfloat16),
            jnp.asarray(bias, jnp.float32),
            jnp.asarray(scale, jnp.float32),
            jnp.asarray(shift, jnp.float32))


# ----------------------------------------------------------------------------
# Device forward: adjacency build (directly in contraction layout), RGCN stack
# kernel, global mean-subtract and the tiny edge scorer as fused jnp (XLA).
# ----------------------------------------------------------------------------
@jax.jit
def device_forward(stacks, scorer, x, edge_index, edge_attr):
    w_cat, root, bias, scale, shift = stacks
    n, c = x.shape
    c_pad = w_cat.shape[1]
    n_pad = _bucket_nodes(n)

    src, dst = edge_index[0], edge_index[1]
    # A_t[n', r*N_pad + m] = A_r[n', m], mean-normalized per (node, relation)
    # (RGCNConv default aggr='mean'); built directly in the layout the kernel
    # contracts, no [R,N,N] intermediate + transpose pass.
    a = jnp.zeros((n_pad, NUM_RELATIONS, n_pad), jnp.float32)
    a = a.at[dst, edge_attr, src].add(1.0)
    deg = jnp.sum(a, axis=2, keepdims=True)
    a = a / jnp.maximum(deg, 1.0)
    a_t = a.reshape(n_pad, NUM_RELATIONS * n_pad).astype(jnp.bfloat16)

    x_pad = jnp.zeros((n_pad, c_pad), jnp.float32).at[:n, :c].set(x)

    out = rgcn_stack_forward(a_t, x_pad, w_cat, root, bias, scale, shift)
    residue = out[:n, 0:1]
    # Reference does a global mean over all nodes (ignores `batch`), match it.
    residue = residue - jnp.mean(residue)

    # Edge scorer: Linear(2,2) -> LeakyReLU -> Linear(2,1) -> Sigmoid (plain
    # jnp; a dozen VPU ops don't justify a separate pallas_call).
    rs = residue[:, 0]
    feat = jnp.stack([rs[src], rs[dst]], axis=-1)          # [E, 2]
    hg = feat @ scorer["lin2_w"] + scorer["lin2_b"]
    hg = jnp.where(hg > 0, hg, LEAKY_SLOPE * hg)
    raw = (hg @ scorer["lin_w"])[:, 0] + scorer["lin_b"][0]
    escores = jax.nn.sigmoid(raw)
    return residue, escores


# ----------------------------------------------------------------------------
# Host-side sequential graph pooling (no clean Pallas equivalent)
# ----------------------------------------------------------------------------
# TODO(synk): greedy edge contraction / coalesce / cluster loops are data-
# dependent sequential scalar control flow -> executed on host, same semantics.
def merge_edges_host(x_np, edge_index_np, onehot_attr_np, batch_np, edge_score_np,
                     min_edge_score, min_edge_percentile):
    n = x_np.shape[0]
    cluster = np.zeros(n, dtype=np.int64)
    perm = np.argsort(-edge_score_np, kind="stable")
    mask = np.ones(n, dtype=bool)
    i = 0
    new_edge_indices = []
    counter = 0
    for edge_idx in perm:
        counter += 1
        if counter >= len(perm) * (1 - min_edge_percentile):
            break
        if edge_score_np[edge_idx] < min_edge_score:
            break
        source = int(edge_index_np[0, edge_idx])
        if not mask[source]:
            continue
        target = int(edge_index_np[1, edge_idx])
        if not mask[target]:
            continue
        new_edge_indices.append(int(edge_idx))
        cluster[source] = i
        mask[source] = False
        if source != target:
            cluster[target] = i
            mask[target] = False
        i += 1
    j = int(mask.sum())
    cluster[mask] = np.arange(i, i + j)
    i += j

    # scatter-mean of x into clusters
    new_x = np.zeros((i, x_np.shape[1]), dtype=np.float32)
    counts = np.zeros((i,), dtype=np.float32)
    np.add.at(new_x, cluster, x_np.astype(np.float32))
    np.add.at(counts, cluster, 1.0)
    new_x = new_x / np.maximum(counts, 1.0)[:, None]

    new_edge_score = edge_score_np[new_edge_indices] if new_edge_indices else \
        np.zeros((0,), dtype=np.float32)
    if mask.sum() > 0:
        remaining = np.zeros((new_x.shape[0] - len(new_edge_indices),),
                             dtype=np.float32)
        new_edge_score = np.concatenate([new_edge_score, remaining])
    new_x = new_x * new_edge_score[:, None]

    # coalesce(cluster[edge_index], onehot_attr, num_nodes=i), reduce='sum'
    ce = cluster[edge_index_np]
    keys = ce[0] * i + ce[1]
    unique_keys, inv = np.unique(keys, return_inverse=True)
    new_e = unique_keys.shape[0]
    new_edge_index = np.stack([unique_keys // i, unique_keys % i]).astype(np.int64)
    new_edge_attr = np.zeros((new_e, onehot_attr_np.shape[1]), dtype=np.int64)
    np.add.at(new_edge_attr, inv, onehot_attr_np)

    # fix_pooled_edge_attrs
    for r in range(new_e):
        if new_edge_attr[r].sum() > 1:
            ind = int(np.argmax(new_edge_attr[r] >= 1))
            row = np.zeros(NUM_RELATIONS, dtype=np.int64)
            row[ind] = 1
            new_edge_attr[r] = row

    new_batch = np.zeros((new_x.shape[0],), dtype=np.int64)
    new_batch[cluster] = batch_np
    return new_x, new_edge_index, new_edge_attr, new_batch, cluster, new_edge_score


def make_x_cluster_host(x_np, cluster, y_2d):
    new_size = int(cluster.max())
    new_x = np.zeros((new_size + 1, x_np.shape[1]), dtype=np.float32)
    for v in np.unique(cluster):
        idx = np.nonzero(cluster == v)[0]
        if idx.shape[0] == 2:
            tmp_x = x_np[idx].astype(np.float32).copy()
            tmp_y = y_2d[idx]
            tot_1, tot_2 = tmp_y[0][1], tmp_y[1][1]
            tmp_x[0] = tmp_x[0] * tot_1
            tmp_x[1] = tmp_x[1] * tot_2
            tmp_x = tmp_x.sum(0) / (tot_1 + tot_2)
        else:
            tmp_x = x_np[idx][0].astype(np.float32)
        new_x[int(v)] = tmp_x
    return new_x


def make_y_cluster_host(y_2d, cluster):
    new_size = int(cluster.max())
    new_y = np.zeros((new_size + 1, 2), dtype=np.float32)
    for v in np.unique(cluster):
        idx = np.nonzero(cluster == v)[0]
        new_y[int(v)] = y_2d[idx].sum(0)
    return new_y


def transform_edge_attr_host(attrs):
    res = np.argwhere(attrs == 1)
    return res[:, 1].astype(np.int64)


# ----------------------------------------------------------------------------
# Full RGCNPoolNet forward
# ----------------------------------------------------------------------------
def rgcn_pool_net_forward(params, x, edge_index, edge_attr, batch, y_2d,
                          min_edge_score, min_edge_percentile):
    c_in = x.shape[1]
    c_pad = max(LANE, _round_up(c_in, LANE))
    stacks = build_rgcn_stacks(params, c_in, c_pad)
    scorer = {"lin2_w": params["lin2_w"], "lin2_b": params["lin2_b"],
              "lin_w": params["lin_w"], "lin_b": params["lin_b"]}

    residue_scores, escores = device_forward(stacks, scorer, x,
                                             edge_index, edge_attr)

    # host side
    rs_np = np.asarray(jax.device_get(residue_scores))
    es_np = np.asarray(jax.device_get(escores))
    ei_np = np.asarray(jax.device_get(edge_index))
    ea_np = np.asarray(jax.device_get(edge_attr))
    batch_np = np.asarray(jax.device_get(batch)).astype(np.int64)
    y2d_np = np.asarray(jax.device_get(y_2d))
    x_np = np.asarray(jax.device_get(x))

    onehot = np.eye(NUM_RELATIONS, dtype=np.int64)[ea_np]          # [E, 20]

    (new_x, new_edge_index, new_edge_attr, new_batch, cluster,
     new_edge_score) = merge_edges_host(rs_np, ei_np, onehot, batch_np, es_np,
                                        min_edge_score, min_edge_percentile)
    del new_x  # pooled x is overwritten by make_x_cluster in the original forward

    unpool = UnpoolInfo(edge_index=ei_np, cluster=cluster, batch=batch_np,
                        new_edge_score=new_edge_score)
    x_clust = make_x_cluster_host(x_np, cluster, y2d_np)
    x_bad = make_x_cluster_host(rs_np, cluster, y2d_np)
    y_clust = make_y_cluster_host(y2d_np, cluster)
    edge_types = transform_edge_attr_host(new_edge_attr)

    return (x_clust, es_np, unpool, y_clust, new_edge_index, edge_types,
            new_batch, residue_scores, x_bad)


# ----------------------------------------------------------------------------
# Deterministic parameter init (shapes from RGCNPoolNet.__init__; stored in
# [in, out] layout — transpose required when loading real PyTorch checkpoints)
# ----------------------------------------------------------------------------
def init_params(key, embedding_size, num_layers):
    c = embedding_size
    params = {"rgcn": [], "bn": []}
    for l in range(num_layers):
        cout = c if l < num_layers - 1 else 1
        key, k1, k2, k3 = jax.random.split(key, 4)
        params["rgcn"].append(dict(
            weight=0.1 * jax.random.normal(k1, (NUM_RELATIONS, c, cout), jnp.float32),
            root=0.1 * jax.random.normal(k2, (c, cout), jnp.float32),
            bias=0.1 * jax.random.normal(k3, (cout,), jnp.float32),
        ))
    for _ in range(num_layers - 1):
        params["bn"].append(dict(
            gamma=jnp.ones((c,), jnp.float32),
            beta=jnp.zeros((c,), jnp.float32),
            mean=jnp.zeros((c,), jnp.float32),
            var=jnp.ones((c,), jnp.float32),
        ))
    key, k1, k2, k3, k4 = jax.random.split(key, 5)
    params["lin2_w"] = 0.5 * jax.random.normal(k1, (2, 2), jnp.float32)
    params["lin2_b"] = 0.1 * jax.random.normal(k2, (2,), jnp.float32)
    params["lin_w"] = 0.5 * jax.random.normal(k3, (2, 1), jnp.float32)
    params["lin_b"] = 0.1 * jax.random.normal(k4, (1,), jnp.float32)
    return params


if __name__ == "__main__":
    N, C, E = 16, 8, 24          # nodes, embedding_size, edges
    num_RGCN_layers = 3
    min_edge_score = 0.05
    min_edge_percentile = 0.25

    key = jax.random.PRNGKey(0)
    key, kx, ke, ka, ky = jax.random.split(key, 5)
    x = jax.random.normal(kx, (N, C), jnp.float32)
    edge_index = jax.random.randint(ke, (2, E), 0, N, dtype=jnp.int32)
    edge_attr = jax.random.randint(ka, (E,), 0, NUM_RELATIONS, dtype=jnp.int32)
    batch = jnp.zeros((N,), jnp.int32)
    y_2d = jnp.abs(jax.random.normal(ky, (N, 2), jnp.float32)) + 0.1

    params = init_params(jax.random.PRNGKey(42), C, num_RGCN_layers)

    out = rgcn_pool_net_forward(params, x, edge_index, edge_attr, batch, y_2d,
                                min_edge_score, min_edge_percentile)
    jax.block_until_ready(out[7])   # residue_scores (device array)
    print("KERNEL_OK")
</pallas_src>

<mosaic_0001>
module attributes {stable_mosaic.version = 11 : i64} {
  func.func @_rgcn_stack_kernel(%arg0: i32, %arg1: memref<16x320xbf16, #tpu.memory_space<vmem>>, %arg2: memref<16x128xf32, #tpu.memory_space<vmem>>, %arg3: memref<1x128x2560xbf16, #tpu.memory_space<vmem>>, %arg4: memref<1x128x128xbf16, #tpu.memory_space<vmem>>, %arg5: memref<1x1x128xf32, #tpu.memory_space<vmem>>, %arg6: memref<1x1x128xf32, #tpu.memory_space<vmem>>, %arg7: memref<1x1x128xf32, #tpu.memory_space<vmem>>, %arg8: memref<16x128xf32, #tpu.memory_space<vmem>>, %arg9: memref<16x128xf32, #tpu.memory_space<vmem>>, %arg10: memref<320x128xbf16, #tpu.memory_space<vmem>>) attributes {dimension_semantics = [#tpu.dimension_semantics<arbitrary>], iteration_bounds = array<i64: 3>, scalar_prefetch = 0 : i64, scratch_operands = 2 : i64, tpu.core_type = #tpu.core_type<tc>, window_params = [{pipeline_mode = #tpu.pipeline_mode<synchronous>, transform_indices = @transform_0, window_bounds = array<i64: 16, 320>}, {pipeline_mode = #tpu.pipeline_mode<synchronous>, transform_indices = @transform_1, window_bounds = array<i64: 16, 128>}, {transform_indices = @transform_2, window_bounds = array<i64: 1, 128, 2560>}, {transform_indices = @transform_3, window_bounds = array<i64: 1, 128, 128>}, {transform_indices = @transform_4, window_bounds = array<i64: 1, 1, 128>}, {transform_indices = @transform_5, window_bounds = array<i64: 1, 1, 128>}, {transform_indices = @transform_6, window_bounds = array<i64: 1, 1, 128>}, {pipeline_mode = #tpu.pipeline_mode<synchronous>, transform_indices = @transform_7, window_bounds = array<i64: 16, 128>}]} {
    %c0_i32 = arith.constant 0 : i32
    %0 = arith.cmpi eq, %arg0, %c0_i32 : i32
    %1 = arith.extui %0 : i1 to i32
    %c0_i32_0 = arith.constant 0 : i32
    %2 = arith.cmpi ne, %1, %c0_i32_0 : i32
    scf.if %2 {
      %c0_41 = arith.constant 0 : index
      %c0_42 = arith.constant 0 : index
      %66 = vector.load %arg2[%c0_41, %c0_42] : memref<16x128xf32, #tpu.memory_space<vmem>>, vector<16x128xf32>
      %c0_43 = arith.constant 0 : index
      %c0_44 = arith.constant 0 : index
      %67 = vector.load %arg9[%c0_43, %c0_44] : memref<16x128xf32, #tpu.memory_space<vmem>>, vector<16x128xf32>
      tpu.vector_store %arg9[%c0_43, %c0_44], %66 {strides = array<i32>} : memref<16x128xf32, #tpu.memory_space<vmem>>, vector<16x128xf32>,
    } else {
    }
    %c0 = arith.constant 0 : index
    %c0_1 = arith.constant 0 : index
    %3 = vector.load %arg9[%c0, %c0_1] : memref<16x128xf32, #tpu.memory_space<vmem>>, vector<16x128xf32>
    %4 = arith.truncf %3 : vector<16x128xf32> to vector<16x128xbf16>
    %c0_2 = arith.constant 0 : index
    %c0_3 = arith.constant 0 : index
    %c0_4 = arith.constant 0 : index
    %5 = vector.load %arg3[%c0_2, %c0_3, %c0_4] : memref<1x128x2560xbf16, #tpu.memory_space<vmem>>, vector<1x128x2560xbf16>
    %6 = vector.shape_cast %5 : vector<1x128x2560xbf16> to vector<128x2560xbf16>
    %cst = arith.constant dense<0.000000e+00> : vector<16x2560xf32>
    %7 = tpu.matmul %4, %6, %cst {dimension_numbers = #tpu.dot_dimension_numbers<[1], [0], [0], [1], [0, 0, 1, 1], [], []>} : vector<16x128xbf16>, vector<128x2560xbf16>, vector<16x2560xf32> -> vector<16x2560xf32>
    %8 = arith.truncf %7 : vector<16x2560xf32> to vector<16x2560xbf16>
    %9 = vector.extract_strided_slice %8 {offsets = [0, 0], sizes = [16, 128], strides = [1, 1]} : vector<16x2560xbf16> to vector<16x128xbf16>
    %c0_5 = arith.constant 0 : index
    %c0_6 = arith.constant 0 : index
    %10 = vector.load %arg10[%c0_5, %c0_6] : memref<320x128xbf16, #tpu.memory_space<vmem>>, vector<16x128xbf16>
    tpu.vector_store %arg10[%c0_5, %c0_6], %9 {strides = array<i32>} : memref<320x128xbf16, #tpu.memory_space<vmem>>, vector<16x128xbf16>,
    %11 = vector.extract_strided_slice %8 {offsets = [0, 128], sizes = [16, 128], strides = [1, 1]} : vector<16x2560xbf16> to vector<16x128xbf16>
    %c16 = arith.constant 16 : index
    %c0_7 = arith.constant 0 : index
    %12 = vector.load %arg10[%c16, %c0_7] : memref<320x128xbf16, #tpu.memory_space<vmem>>, vector<16x128xbf16>
    tpu.vector_store %arg10[%c16, %c0_7], %11 {strides = array<i32>} : memref<320x128xbf16, #tpu.memory_space<vmem>>, vector<16x128xbf16>,
    %13 = vector.extract_strided_slice %8 {offsets = [0, 256], sizes = [16, 128], strides = [1, 1]} : vector<16x2560xbf16> to vector<16x128xbf16>
    %c32 = arith.constant 32 : index
    %c0_8 = arith.constant 0 : index
    %14 = vector.load %arg10[%c32, %c0_8] : memref<320x128xbf16, #tpu.memory_space<vmem>>, vector<16x128xbf16>
    tpu.vector_store %arg10[%c32, %c0_8], %13 {strides = array<i32>} : memref<320x128xbf16, #tpu.memory_space<vmem>>, vector<16x128xbf16>,
    %15 = vector.extract_strided_slice %8 {offsets = [0, 384], sizes = [16, 128], strides = [1, 1]} : vector<16x2560xbf16> to vector<16x128xbf16>
    %c48 = arith.constant 48 : index
    %c0_9 = arith.constant 0 : index
    %16 = vector.load %arg10[%c48, %c0_9] : memref<320x128xbf16, #tpu.memory_space<vmem>>, vector<16x128xbf16>
    tpu.vector_store %arg10[%c48, %c0_9], %15 {strides = array<i32>} : memref<320x128xbf16, #tpu.memory_space<vmem>>, vector<16x128xbf16>,
    %17 = vector.extract_strided_slice %8 {offsets = [0, 512], sizes = [16, 128], strides = [1, 1]} : vector<16x2560xbf16> to vector<16x128xbf16>
    %c64 = arith.constant 64 : index
    %c0_10 = arith.constant 0 : index
    %18 = vector.load %arg10[%c64, %c0_10] : memref<320x128xbf16, #tpu.memory_space<vmem>>, vector<16x128xbf16>
    tpu.vector_store %arg10[%c64, %c0_10], %17 {strides = array<i32>} : memref<320x128xbf16, #tpu.memory_space<vmem>>, vector<16x128xbf16>,
    %19 = vector.extract_strided_slice %8 {offsets = [0, 640], sizes = [16, 128], strides = [1, 1]} : vector<16x2560xbf16> to vector<16x128xbf16>
    %c80 = arith.constant 80 : index
    %c0_11 = arith.constant 0 : index
    %20 = vector.load %arg10[%c80, %c0_11] : memref<320x128xbf16, #tpu.memory_space<vmem>>, vector<16x128xbf16>
    tpu.vector_store %arg10[%c80, %c0_11], %19 {strides = array<i32>} : memref<320x128xbf16, #tpu.memory_space<vmem>>, vector<16x128xbf16>,
    %21 = vector.extract_strided_slice %8 {offsets = [0, 768], sizes = [16, 128], strides = [1, 1]} : vector<16x2560xbf16> to vector<16x128xbf16>
    %c96 = arith.constant 96 : index
    %c0_12 = arith.constant 0 : index
    %22 = vector.load %arg10[%c96, %c0_12] : memref<320x128xbf16, #tpu.memory_space<vmem>>, vector<16x128xbf16>
    tpu.vector_store %arg10[%c96, %c0_12], %21 {strides = array<i32>} : memref<320x128xbf16, #tpu.memory_space<vmem>>, vector<16x128xbf16>,
    %23 = vector.extract_strided_slice %8 {offsets = [0, 896], sizes = [16, 128], strides = [1, 1]} : vector<16x2560xbf16> to vector<16x128xbf16>
    %c112 = arith.constant 112 : index
    %c0_13 = arith.constant 0 : index
    %24 = vector.load %arg10[%c112, %c0_13] : memref<320x128xbf16, #tpu.memory_space<vmem>>, vector<16x128xbf16>
    tpu.vector_store %arg10[%c112, %c0_13], %23 {strides = array<i32>} : memref<320x128xbf16, #tpu.memory_space<vmem>>, vector<16x128xbf16>,
    %25 = vector.extract_strided_slice %8 {offsets = [0, 1024], sizes = [16, 128], strides = [1, 1]} : vector<16x2560xbf16> to vector<16x128xbf16>
    %c128 = arith.constant 128 : index
    %c0_14 = arith.constant 0 : index
    %26 = vector.load %arg10[%c128, %c0_14] : memref<320x128xbf16, #tpu.memory_space<vmem>>, vector<16x128xbf16>
    tpu.vector_store %arg10[%c128, %c0_14], %25 {strides = array<i32>} : memref<320x128xbf16, #tpu.memory_space<vmem>>, vector<16x128xbf16>,
    %27 = vector.extract_strided_slice %8 {offsets = [0, 1152], sizes = [16, 128], strides = [1, 1]} : vector<16x2560xbf16> to vector<16x128xbf16>
    %c144 = arith.constant 144 : index
    %c0_15 = arith.constant 0 : index
    %28 = vector.load %arg10[%c144, %c0_15] : memref<320x128xbf16, #tpu.memory_space<vmem>>, vector<16x128xbf16>
    tpu.vector_store %arg10[%c144, %c0_15], %27 {strides = array<i32>} : memref<320x128xbf16, #tpu.memory_space<vmem>>, vector<16x128xbf16>,
    %29 = vector.extract_strided_slice %8 {offsets = [0, 1280], sizes = [16, 128], strides = [1, 1]} : vector<16x2560xbf16> to vector<16x128xbf16>
    %c160 = arith.constant 160 : index
    %c0_16 = arith.constant 0 : index
    %30 = vector.load %arg10[%c160, %c0_16] : memref<320x128xbf16, #tpu.memory_space<vmem>>, vector<16x128xbf16>
    tpu.vector_store %arg10[%c160, %c0_16], %29 {strides = array<i32>} : memref<320x128xbf16, #tpu.memory_space<vmem>>, vector<16x128xbf16>,
    %31 = vector.extract_strided_slice %8 {offsets = [0, 1408], sizes = [16, 128], strides = [1, 1]} : vector<16x2560xbf16> to vector<16x128xbf16>
    %c176 = arith.constant 176 : index
    %c0_17 = arith.constant 0 : index
    %32 = vector.load %arg10[%c176, %c0_17] : memref<320x128xbf16, #tpu.memory_space<vmem>>, vector<16x128xbf16>
    tpu.vector_store %arg10[%c176, %c0_17], %31 {strides = array<i32>} : memref<320x128xbf16, #tpu.memory_space<vmem>>, vector<16x128xbf16>,
    %33 = vector.extract_strided_slice %8 {offsets = [0, 1536], sizes = [16, 128], strides = [1, 1]} : vector<16x2560xbf16> to vector<16x128xbf16>
    %c192 = arith.constant 192 : index
    %c0_18 = arith.constant 0 : index
    %34 = vector.load %arg10[%c192, %c0_18] : memref<320x128xbf16, #tpu.memory_space<vmem>>, vector<16x128xbf16>
    tpu.vector_store %arg10[%c192, %c0_18], %33 {strides = array<i32>} : memref<320x128xbf16, #tpu.memory_space<vmem>>, vector<16x128xbf16>,
    %35 = vector.extract_strided_slice %8 {offsets = [0, 1664], sizes = [16, 128], strides = [1, 1]} : vector<16x2560xbf16> to vector<16x128xbf16>
    %c208 = arith.constant 208 : index
    %c0_19 = arith.constant 0 : index
    %36 = vector.load %arg10[%c208, %c0_19] : memref<320x128xbf16, #tpu.memory_space<vmem>>, vector<16x128xbf16>
    tpu.vector_store %arg10[%c208, %c0_19], %35 {strides = array<i32>} : memref<320x128xbf16, #tpu.memory_space<vmem>>, vector<16x128xbf16>,
    %37 = vector.extract_strided_slice %8 {offsets = [0, 1792], sizes = [16, 128], strides = [1, 1]} : vector<16x2560xbf16> to vector<16x128xbf16>
    %c224 = arith.constant 224 : index
    %c0_20 = arith.constant 0 : index
    %38 = vector.load %arg10[%c224, %c0_20] : memref<320x128xbf16, #tpu.memory_space<vmem>>, vector<16x128xbf16>
    tpu.vector_store %arg10[%c224, %c0_20], %37 {strides = array<i32>} : memref<320x128xbf16, #tpu.memory_space<vmem>>, vector<16x128xbf16>,
    %39 = vector.extract_strided_slice %8 {offsets = [0, 1920], sizes = [16, 128], strides = [1, 1]} : vector<16x2560xbf16> to vector<16x128xbf16>
    %c240 = arith.constant 240 : index
    %c0_21 = arith.constant 0 : index
    %40 = vector.load %arg10[%c240, %c0_21] : memref<320x128xbf16, #tpu.memory_space<vmem>>, vector<16x128xbf16>
    tpu.vector_store %arg10[%c240, %c0_21], %39 {strides = array<i32>} : memref<320x128xbf16, #tpu.memory_space<vmem>>, vector<16x128xbf16>,
    %41 = vector.extract_strided_slice %8 {offsets = [0, 2048], sizes = [16, 128], strides = [1, 1]} : vector<16x2560xbf16> to vector<16x128xbf16>
    %c256 = arith.constant 256 : index
    %c0_22 = arith.constant 0 : index
    %42 = vector.load %arg10[%c256, %c0_22] : memref<320x128xbf16, #tpu.memory_space<vmem>>, vector<16x128xbf16>
    tpu.vector_store %arg10[%c256, %c0_22], %41 {strides = array<i32>} : memref<320x128xbf16, #tpu.memory_space<vmem>>, vector<16x128xbf16>,
    %43 = vector.extract_strided_slice %8 {offsets = [0, 2176], sizes = [16, 128], strides = [1, 1]} : vector<16x2560xbf16> to vector<16x128xbf16>
    %c272 = arith.constant 272 : index
    %c0_23 = arith.constant 0 : index
    %44 = vector.load %arg10[%c272, %c0_23] : memref<320x128xbf16, #tpu.memory_space<vmem>>, vector<16x128xbf16>
    tpu.vector_store %arg10[%c272, %c0_23], %43 {strides = array<i32>} : memref<320x128xbf16, #tpu.memory_space<vmem>>, vector<16x128xbf16>,
    %45 = vector.extract_strided_slice %8 {offsets = [0, 2304], sizes = [16, 128], strides = [1, 1]} : vector<16x2560xbf16> to vector<16x128xbf16>
    %c288 = arith.constant 288 : index
    %c0_24 = arith.constant 0 : index
    %46 = vector.load %arg10[%c288, %c0_24] : memref<320x128xbf16, #tpu.memory_space<vmem>>, vector<16x128xbf16>
    tpu.vector_store %arg10[%c288, %c0_24], %45 {strides = array<i32>} : memref<320x128xbf16, #tpu.memory_space<vmem>>, vector<16x128xbf16>,
    %47 = vector.extract_strided_slice %8 {offsets = [0, 2432], sizes = [16, 128], strides = [1, 1]} : vector<16x2560xbf16> to vector<16x128xbf16>
    %c304 = arith.constant 304 : index
    %c0_25 = arith.constant 0 : index
    %48 = vector.load %arg10[%c304, %c0_25] : memref<320x128xbf16, #tpu.memory_space<vmem>>, vector<16x128xbf16>
    tpu.vector_store %arg10[%c304, %c0_25], %47 {strides = array<i32>} : memref<320x128xbf16, #tpu.memory_space<vmem>>, vector<16x128xbf16>,
    %c0_26 = arith.constant 0 : index
    %c0_27 = arith.constant 0 : index
    %49 = vector.load %arg1[%c0_26, %c0_27] : memref<16x320xbf16, #tpu.memory_space<vmem>>, vector<16x320xbf16>
    %c0_28 = arith.constant 0 : index
    %c0_29 = arith.constant 0 : index
    %50 = vector.load %arg10[%c0_28, %c0_29] : memref<320x128xbf16, #tpu.memory_space<vmem>>, vector<320x128xbf16>
    %cst_30 = arith.constant dense<0.000000e+00> : vector<16x128xf32>
    %51 = tpu.matmul %49, %50, %cst_30 {dimension_numbers = #tpu.dot_dimension_numbers<[1], [0], [0], [1], [0, 0, 1, 1], [], []>} : vector<16x320xbf16>, vector<320x128xbf16>, vector<16x128xf32> -> vector<16x128xf32>
    %c0_31 = arith.constant 0 : index
    %c0_32 = arith.constant 0 : index
    %c0_33 = arith.constant 0 : index
    %52 = vector.load %arg4[%c0_31, %c0_32, %c0_33] : memref<1x128x128xbf16, #tpu.memory_space<vmem>>, vector<1x128x128xbf16>
    %53 = vector.shape_cast %52 : vector<1x128x128xbf16> to vector<128x128xbf16>
    %cst_34 = arith.constant dense<0.000000e+00> : vector<16x128xf32>
    %54 = tpu.matmul %4, %53, %cst_34 {dimension_numbers = #tpu.dot_dimension_numbers<[1], [0], [0], [1], [0, 0, 1, 1], [], []>} : vector<16x128xbf16>, vector<128x128xbf16>, vector<16x128xf32> -> vector<16x128xf32>
    %55 = arith.addf %51, %54 : vector<16x128xf32>
    %c0_35 = arith.constant 0 : index
    %c0_36 = arith.constant 0 : index
    %c0_37 = arith.constant 0 : index
    %56 = vector.load %arg5[%c0_35, %c0_36, %c0_37] : memref<1x1x128xf32, #tpu.memory_space<vmem>>, vector<1x1x128xf32>
    %57 = vector.shape_cast %56 : vector<1x1x128xf32> to vector<1x128xf32>
    %58 = vector.broadcast %57 : vector<1x128xf32> to vector<16x128xf32>
    %59 = arith.addf %55, %58 : vector<16x128xf32>
    %c2_i32 = arith.constant 2 : i32
    %60 = arith.cmpi slt, %arg0, %c2_i32 : i32
    %61 = arith.extui %60 : i1 to i32
    %c0_i32_38 = arith.constant 0 : i32
    %62 = arith.cmpi ne, %61, %c0_i32_38 : i32
    scf.if %62 {
      %c0_41 = arith.constant 0 : index
      %c0_42 = arith.constant 0 : index
      %c0_43 = arith.constant 0 : index
      %66 = vector.load %arg6[%c0_41, %c0_42, %c0_43] : memref<1x1x128xf32, #tpu.memory_space<vmem>>, vector<1x1x128xf32>
      %67 = vector.shape_cast %66 : vector<1x1x128xf32> to vector<1x128xf32>
      %68 = vector.broadcast %67 : vector<1x128xf32> to vector<16x128xf32>
      %69 = arith.mulf %59, %68 : vector<16x128xf32>
      %c0_44 = arith.constant 0 : index
      %c0_45 = arith.constant 0 : index
      %c0_46 = arith.constant 0 : index
      %70 = vector.load %arg7[%c0_44, %c0_45, %c0_46] : memref<1x1x128xf32, #tpu.memory_space<vmem>>, vector<1x1x128xf32>
      %71 = vector.shape_cast %70 : vector<1x1x128xf32> to vector<1x128xf32>
      %72 = vector.broadcast %71 : vector<1x128xf32> to vector<16x128xf32>
      %73 = arith.addf %69, %72 : vector<16x128xf32>
      %cst_47 = arith.constant 0.000000e+00 : f32
      %74 = vector.broadcast %cst_47 : f32 to vector<16x128xf32>
      %75 = arith.cmpf ogt, %73, %74 : vector<16x128xf32>
      %cst_48 = arith.constant 0.00999999977 : f32
      %76 = vector.broadcast %cst_48 : f32 to vector<16x128xf32>
      %77 = arith.mulf %76, %73 : vector<16x128xf32>
      %78 = arith.select %75, %73, %77 : vector<16x128xi1>, vector<16x128xf32>
      %c0_49 = arith.constant 0 : index
      %c0_50 = arith.constant 0 : index
      %79 = vector.load %arg9[%c0_49, %c0_50] : memref<16x128xf32, #tpu.memory_space<vmem>>, vector<16x128xf32>
      tpu.vector_store %arg9[%c0_49, %c0_50], %78 {strides = array<i32>} : memref<16x128xf32, #tpu.memory_space<vmem>>, vector<16x128xf32>,
    } else {
    }
    %c2_i32_39 = arith.constant 2 : i32
    %63 = arith.cmpi eq, %arg0, %c2_i32_39 : i32
    %64 = arith.extui %63 : i1 to i32
    %c0_i32_40 = arith.constant 0 : i32
    %65 = arith.cmpi ne, %64, %c0_i32_40 : i32
    scf.if %65 {
      %c0_41 = arith.constant 0 : index
      %c0_42 = arith.constant 0 : index
      %66 = vector.load %arg8[%c0_41, %c0_42] : memref<16x128xf32, #tpu.memory_space<vmem>>, vector<16x128xf32>
      tpu.vector_store %arg8[%c0_41, %c0_42], %59 {strides = array<i32>} : memref<16x128xf32, #tpu.memory_space<vmem>>, vector<16x128xf32>,
    } else {
    }
    return
  }
  func.func @transform_0(%arg0: i32) -> (i32, i32) {
    %c0_i32 = arith.constant 0 : i32
    %c0_i32_0 = arith.constant 0 : i32
    %c0_i32_1 = arith.constant 0 : i32
    return %c0_i32, %c0_i32_0 : i32, i32
  }
  func.func @transform_1(%arg0: i32) -> (i32, i32) {
    %c0_i32 = arith.constant 0 : i32
    %c0_i32_0 = arith.constant 0 : i32
    %c0_i32_1 = arith.constant 0 : i32
    return %c0_i32, %c0_i32_0 : i32, i32
  }
  func.func @transform_2(%arg0: i32) -> (i32, i32, i32) {
    %c0_i32 = arith.constant 0 : i32
    %c0_i32_0 = arith.constant 0 : i32
    %c0_i32_1 = arith.constant 0 : i32
    return %arg0, %c0_i32, %c0_i32_0 : i32, i32, i32
  }
  func.func @transform_3(%arg0: i32) -> (i32, i32, i32) {
    %c0_i32 = arith.constant 0 : i32
    %c0_i32_0 = arith.constant 0 : i32
    %c0_i32_1 = arith.constant 0 : i32
    return %arg0, %c0_i32, %c0_i32_0 : i32, i32, i32
  }
  func.func @transform_4(%arg0: i32) -> (i32, i32, i32) {
    %c0_i32 = arith.constant 0 : i32
    %c0_i32_0 = arith.constant 0 : i32
    %c0_i32_1 = arith.constant 0 : i32
    return %arg0, %c0_i32, %c0_i32_0 : i32, i32, i32
  }
  func.func @transform_5(%arg0: i32) -> (i32, i32, i32) {
    %c0_i32 = arith.constant 0 : i32
    %c0_i32_0 = arith.constant 0 : i32
    %c0_i32_1 = arith.constant 0 : i32
    return %arg0, %c0_i32, %c0_i32_0 : i32, i32, i32
  }
  func.func @transform_6(%arg0: i32) -> (i32, i32, i32) {
    %c0_i32 = arith.constant 0 : i32
    %c0_i32_0 = arith.constant 0 : i32
    %c0_i32_1 = arith.constant 0 : i32
    return %arg0, %c0_i32, %c0_i32_0 : i32, i32, i32
  }
  func.func @transform_7(%arg0: i32) -> (i32, i32) {
    %c0_i32 = arith.constant 0 : i32
    %c0_i32_0 = arith.constant 0 : i32
    %c0_i32_1 = arith.constant 0 : i32
    return %c0_i32, %c0_i32_0 : i32, i32
  }
}

</mosaic_0001>

<bundles_post_ra>
// kernel: device_forward.1
= control target key start
LH: loop header
LB: loop body
LE: loop exit
PB: predicated region body
PF: predicated region fallthrough
CT: control target
= control target key end

     0   :  { %s4082_s0 = inlined_call_operand.vmem [shape: bf16[16,320], index: 0, kind: input, shape index: {}]   ;;  %s4083_s1 = inlined_call_operand.vmem [shape: f32[16,128], index: 1, kind: input, shape index: {}]   ;;  %s4084_s2 = inlined_call_operand.hbm [shape: bf16[3,128,2560], index: 2, kind: input, shape index: {}]   ;;  %s4085_s3 = inlined_call_operand.vmem [shape: bf16[3,128,128], index: 3, kind: input, shape index: {}]   ;;  %s4086_s4 = inlined_call_operand.hbm [shape: f32[3,1,128], index: 4, kind: input, shape index: {}]   ;;  %s4087_s5 = inlined_call_operand.hbm [shape: f32[3,1,128], index: 5, kind: input, shape index: {}]   ;;  %s4088_s6 = inlined_call_operand.hbm [shape: f32[3,1,128], index: 6, kind: input, shape index: {}]   ;;  %s4089_s7 = inlined_call_operand.vmem [shape: f32[16,128], index: 7, kind: output, shape index: {}]  }
   0x1   :  { %4091 = sst [smem:[#allocation16_spill]] %s4086_s4 }
   0x2   :  { %12 = vsyncpa [#allocation5], 0 }
   0x3   :  { %14 = vsyncpa [#allocation5 + $0x1], 0 }
   0x4   :  { %15 = vsyncpa [#allocation7], 0 }
   0x5   :  { %17 = vsyncpa [#allocation7 + $0x1], 0 }
   0x6   :  { %18 = vsyncpa [#allocation10], 0 }
   0x7   :  { %20 = vsyncpa [#allocation10 + $0x1], 0  ;;  %s3520_s24 = smov 0   ;;  %s3522_s25 = smov 0  }
   0x8   :  { %s3524_s26 = smov 0   ;;  %s3526_s27 = smov 0  }
   0x9 LB: > { %4092 = sst [smem:[#allocation14_spill]] %s3472_s26  ;;  %s3539_s28 = sadd.s32 4294967295, %s3476_s27   ;;  %s3476_s27 = sphi %s3526_s27, %s4102_s27   ;;  %s3472_s26 = sphi %s3524_s26, %s4099_s26   ;;  %s3468_s25 = sphi %s3522_s25, %s4101_s25   ;;  %s3464_s24 = sphi %s3520_s24, %s4100_s24  }
   0xa   : > { %s3542_s29 = sadd.s32 1, %s3476_s27   ;;  %s75_s8 = sadd.s32 1, %s3472_s26 }
   0xb   : > { %s72_s30 = ssub.s32 %s3476_s27, %s3542_s29  ;;  %p82_p1 = scmp.ne.s32.totalorder %s3472_s26, %s3468_s25 }
   0xc   : > { %p73_p0 = scmp.eq.s32.totalorder %s72_s30, 0  ;;  %p83_p2 = scmp.eq.s32.totalorder %s3476_s27, 0 }
   0xd   : > { %p88_p3 = scmp.ne.s32.totalorder %s3468_s25, %s3464_s24  ;;  %p89_p5 = scmp.eq.s32.totalorder %s3539_s28, 0 }
   0xe   : > { %s3552_s9 = scalar_select %p73_p0, %s3472_s26, %s75_s8  }
   0xf   : > { %p84_p4 = por %p83_p2, %p82_p1  ;;  %p3276_p6 = scmp.lt.s32.totalorder %s3476_s27, 3 }
  0x10   : > { %4093 = sst [smem:[#allocation15_spill]] %s3552_s9  ;;  %p3556_p7 = por %p89_p5, %p88_p3 }
  0x11   : > { %s3561_s11 = sand.u32 1, %s3472_s26   ;;  %p3563_p8 = pnand %p3276_p6, %p84_p4 }
  0x12   : > { %s273_s13 = sand.u32 1, %s3476_s27   ;;  %s4096_s4 = sld [smem:[#allocation16_spill]] }
  0x13   : > { %s276_s18 = scalar_lea.vmem [#allocation6], %s3561_s11  ;;  %s3573_s20 = scalar_lea.sflag [#allocation7], %s273_s13 }
  0x14   : > { %s283_s19 = sshll.u32 %s276_s18, 4  ;;  %p3318_p10 = pneg %p3563_p8  ;;  %s284_s19 = int_to_ptr.vmem [resolvable:$true] %s283_s19 }
  0x18   : > { %s279_s16 = scalar_lea.hbm %s4096_s4, %s3476_s27  ;;  %s3321_s30 = scalar_lea.hbm %s4096_s4, 3 }
  0x19   : > { %s281_s17 = sshll.u32 %s279_s16, 4  ;;  %s282_s17 = int_to_ptr.hbm [resolvable:$true] %s281_s17 }
  0x1a   : > { %s3314_s21 = sshra.s32 %s282_s17, 4  ;;  %s3315_s21 = int_to_ptr.hbm [resolvable:$true] %s3314_s21 }
  0x1b   : > { %s3316_s22 = scalar_lea.hbm %s3315_s21, 1  ;;  %p3322_p13 = scmp.lt.s32.totalorder %s3315_s21, %s4096_s4 }
  0x1c   : > { %p3317_p9 = scmp.ne.s32.totalorder %s3315_s21, %s3316_s22  ;;  %p3323_p0 = scmp.lt.s32.totalorder %s3321_s30, %s3316_s22 }
  0x1e   : > { %p3319_p11 = pnand %p3318_p10, %p3317_p9  ;;  %p3324_p1 = por %p3323_p0, %p3322_p13 }
  0x20   : > { %p3320_p12 = pneg %p3319_p11 }
  0x22   : > { %p3325_p2 = pnand %p3324_p1, %p3320_p12 }
  0x24   : > { %3328 = shalt.err (!%p3325_p2)
}
  0x25   : > { %3269 = dma.hbm_to_vmem [thread:$0]  (!%p3563_p8), %s282_s17, 16, %s284_s19, %s3573_s20  }
  0x26   : > { %p2228_p3 = scmp.ge.s32.totalorder %s3476_s27, 1  ;;  %p322_p4 = scmp.lt.s32.totalorder %s3476_s27, 4 }
  0x27   : > { %s3252_s13 = smul.u32 1280, %s3561_s11  ;;  %s244_s8 = scalar_lea.sflag [#allocation5], %s3561_s11 }
  0x28   : > { %p3592_p5 = pnand %p2228_p3, %p322_p4  ;;  %s3253_s16 = smul.u32 1280, %s3476_s27 }
  0x29   : > { %s247_s23 = scalar_lea.vmem [#allocation4], %s3252_s13  ;;  %s3351_s9 = scalar_lea.hbm %s4084_s2, 3840 }
  0x2a   : > { %s252_s22 = scalar_lea.hbm %s4084_s2, %s3253_s16  ;;  %s255_s24 = sshll.u32 %s247_s23, 4  ;;  %s256_s24 = int_to_ptr.vmem [resolvable:$true] %s255_s24 }
  0x2b   : > { %s253_s30 = sshll.u32 %s252_s22, 4  ;;  %s254_s30 = int_to_ptr.hbm [resolvable:$true] %s253_s30 }
  0x2c   : > { %s3344_s17 = sshra.s32 %s254_s30, 4  ;;  %s3345_s17 = int_to_ptr.hbm [resolvable:$true] %s3344_s17 }
  0x2d   : > { %s3346_s19 = scalar_lea.hbm %s3345_s17, 1280  ;;  %p3352_p12 = scmp.lt.s32.totalorder %s3345_s17, %s4084_s2 }
  0x2e   : > { %p3347_p6 = scmp.ne.s32.totalorder %s3345_s17, %s3346_s19  ;;  %p3353_p13 = scmp.lt.s32.totalorder %s3351_s9, %s3346_s19 }
  0x30   : > { %p3349_p9 = pnand %p3347_p6, %p3318_p10  ;;  %p3354_p0 = por %p3353_p13, %p3352_p12 }
  0x32   : > { %p3350_p11 = pneg %p3349_p9 }
  0x34   : > { %p3355_p1 = pnand %p3354_p0, %p3350_p11 }
  0x36   : > { %3358 = shalt.err (!%p3355_p1)
}
  0x37   : > { %s3478_s13 = smov 1280   ;;  %s3479_s21 = smov 80  }
  0x38   : > { %3266 = dma.hbm_to_vmem [thread:$0]  (!%p3563_p8), %s254_s30, 20480, %s256_s24, %s244_s8, %s3478_s13, %s3478_s13, %s3479_s21  }
  0x39   : > { %s296_s4 = scalar_lea.hbm %s4087_s5, %s3476_s27  ;;  %s293_s26 = scalar_lea.vmem [#allocation8], %s3561_s11 }
  0x3a   : > { %s298_s14 = sshll.u32 %s296_s4, 4  ;;  %s300_s18 = sshll.u32 %s293_s26, 4  ;;  %s299_s14 = int_to_ptr.hbm [resolvable:$true] %s298_s14  ;;  %s301_s18 = int_to_ptr.vmem [resolvable:$true] %s300_s18 }
  0x3b   : > { %s3374_s9 = sshra.s32 %s299_s14, 4  ;;  %s3381_s24 = scalar_lea.hbm %s4087_s5, 3  ;;  %s3375_s9 = int_to_ptr.hbm [resolvable:$true] %s3374_s9 }
  0x3c   : > { %s3376_s17 = scalar_lea.hbm %s3375_s9, 1  ;;  %p3382_p6 = scmp.lt.s32.totalorder %s3375_s9, %s4087_s5 }
  0x3d   : > { %p3377_p2 = scmp.ne.s32.totalorder %s3375_s9, %s3376_s17  ;;  %p3383_p9 = scmp.lt.s32.totalorder %s3381_s24, %s3376_s17 }
  0x3f   : > { %p3379_p3 = pnand %p3377_p2, %p3318_p10  ;;  %p3384_p11 = por %p3383_p9, %p3382_p6 }
  0x41   : > { %p3380_p4 = pneg %p3379_p3 }
  0x43   : > { %p3385_p12 = pnand %p3384_p11, %p3380_p4 }
  0x45   : > { %3388 = shalt.err (!%p3385_p12)
}
  0x46   : > { %3272 = dma.hbm_to_vmem [thread:$0]  (!%p3563_p8), %s299_s14, 16, %s301_s18, %s3573_s20  }
  0x47   : > { %s313_s21 = scalar_lea.hbm %s4088_s6, %s3476_s27  ;;  %s310_s22 = scalar_lea.vmem [#allocation9], %s3561_s11 }
  0x48   : > { %s317_s23 = sshll.u32 %s310_s22, 4  ;;  %s315_s4 = sshll.u32 %s313_s21, 4  ;;  %s318_s23 = int_to_ptr.vmem [resolvable:$true] %s317_s23  ;;  %s316_s4 = int_to_ptr.hbm [resolvable:$true] %s315_s4 }
  0x49   : > { %s308_s9 = scalar_lea.sflag [#allocation10], %s3561_s11  ;;  %s3404_s17 = sshra.s32 %s316_s4, 4  ;;  %s3405_s17 = int_to_ptr.hbm [resolvable:$true] %s3404_s17 }
  0x4a   : > { %s3406_s19 = scalar_lea.hbm %s3405_s17, 1  ;;  %s3411_s14 = scalar_lea.hbm %s4088_s6, 3 }
  0x4b   : > { %p3407_p13 = scmp.ne.s32.totalorder %s3405_s17, %s3406_s19  ;;  %p3412_p2 = scmp.lt.s32.totalorder %s3405_s17, %s4088_s6 }
  0x4c   : > { %p3413_p3 = scmp.lt.s32.totalorder %s3411_s14, %s3406_s19 }
  0x4d   : > { %p3409_p0 = pnand %p3407_p13, %p3318_p10 }
  0x4e   : > { %p3414_p4 = por %p3413_p3, %p3412_p2 }
  0x4f   : > { %p3410_p1 = pneg %p3409_p0 }
  0x51   : > { %p3415_p6 = pnand %p3414_p4, %p3410_p1 }
  0x53   : > { %3418 = shalt.err (!%p3415_p6)
}
  0x54   : > { %3275 = dma.hbm_to_vmem [thread:$0]  (!%p3563_p8), %s316_s4, 16, %s318_s23, %s308_s9  }
  0x55   : > { %326 = sbr.rel (%p3592_p5) target bundleno = 600 (0x258), region = 48  ;;  %s3649_s11 = sand.u32 (!%p3592_p5), 1, %s3468_s25  }
  0x56   : > { %s3254_s24 = smul.u32 (!%p3592_p5), 1280, %s3649_s11  ;;  %s329_s30 = scalar_lea.sflag (!%p3592_p5), [#allocation5], %s3649_s11 }
  0x58   : > { %s3653_s8 = scalar_lea.vmem (!%p3592_p5), [#allocation4], %s3254_s24 }
  0x5a   : > { %3451 = dma.done.wait (%p3556_p7), %s329_s30, 20480  }
  0x5b   : > { %3453 = vsyncadd (%p3556_p7), %s329_s30, 4294946816  ;;  %s338_s12 = sand.u32 1, %s3539_s28   ;;  %s341_s26 = scalar_lea.vmem [#allocation6], %s3649_s11 }
  0x5c   : > { %s339_s15 = scalar_lea.sflag [#allocation7], %s338_s12 }
  0x5d   : > { %3455 = dma.done.wait (%p3556_p7), %s339_s15, 32  }
  0x5e   : > { %3457 = vsyncadd (%p3556_p7), %s339_s15, 4294967264  ;;  %s350_s13 = scalar_lea.vmem [#allocation8], %s3649_s11  ;;  %s357_s21 = scalar_lea.sflag [#allocation10], %s3649_s11 }
  0x5f   : > { %s359_s22 = scalar_lea.vmem [#allocation9], %s3649_s11 }
  0x60   : > { %3459 = dma.done.wait (%p3556_p7), %s357_s21, 16  }
  0x61   : > { %3461 = vsyncadd (%p3556_p7), %s357_s21, 4294967280  ;;  %p403_p8 = scmp.lt.s32.totalorder %s3539_s28, 2  ;;  %p2231_p10 = scmp.ne.s32.totalorder %s3539_s28, 0 }
  0x63   : > { %s404_s23 = scalar_select %p403_p8, %s3539_s28, 2 }
  0x64   : > { %412 = sbr.rel (%p2231_p10) target bundleno = 108 (0x6c), region = 68 }
  0x65   : > { %s3001_s4 = sshll.u32 %s404_s23, 6 }
  0x66   : > { %s3677_s19 = scalar_lea.vmem %s4085_s3, %s3001_s4 }
  0x69   : > { %v413_v0 = vld [vmem:[%s4083_s1] sm:$0xff]  ;;  %v414_v1 = vld [vmem:[%s4083_s1 + $0x8] sm:$0xff] }
  0x6a   : > { %415 = vst [vmem:[#allocation2] sm:$0xff] %v413_v0 }
  0x6b   : > { %416 = vst [vmem:[#allocation2 + $0x8] sm:$0xff] %v414_v1 }
  0x6c PF: > { %v2802_v2 = vld [vmem:[%s3653_s8 + $0x468] sm:$0xf]  ;;  %v3153_v3 = vld [vmem:[%s3653_s8 + $0x4b4] sm:$0xf0]  ;;  %v3143_v4 = vld [vmem:[%s3653_s8 + $0x46c] sm:$0xf] }
  0x6d   : > { %v2803_v5 = vor.u32 %v3153_v3, %v2802_v2  ;;  %v2804_v6 = vld [vmem:[%s3653_s8 + $0x4b8] sm:$0xf0]  ;;  %v2722_v7 = vld [vmem:[%s3653_s8 + $0x3c8] sm:$0xf]  ;;  %v3133_v8 = vld [vmem:[%s3653_s8 + $0x414] sm:$0xf0] }
  0x6e   : > { %v2807_v9 = vor.u32 %v3143_v4, %v2804_v6  ;;  %v3123_v10 = vld [vmem:[%s3653_s8 + $0x3cc] sm:$0xf]  ;;  %v2724_v11 = vld [vmem:[%s3653_s8 + $0x418] sm:$0xf0]  ;;  %v2794_v12 = vld [vmem:[%s3653_s8 + $0x460] sm:$0xf]  ;;  %v2723_v13 = vor.u32 %v3133_v8, %v2722_v7 }
  0x6f   : > { %1408 = vmatpush.bf16.msra.mxu2 %v2803_v5  ;;  %v3152_v14 = vld [vmem:[%s3653_s8 + $0x4ac] sm:$0xf0]  ;;  %v3142_v15 = vld [vmem:[%s3653_s8 + $0x464] sm:$0xf]  ;;  %v2796_v16 = vld [vmem:[%s3653_s8 + $0x4b0] sm:$0xf0]  ;;  %v2727_v17 = vor.u32 %v3123_v10, %v2724_v11 }
  0x70   : > { %1422 = vmatpush.bf16.msra.mxu3 %v2807_v9  ;;  %v2795_v18 = vor.u32 %v3152_v14, %v2794_v12  ;;  %v2799_v19 = vor.u32 %v3142_v15, %v2796_v16  ;;  %v2642_v20 = vld [vmem:[%s3653_s8 + $0x328] sm:$0xf]  ;;  %v3113_v21 = vld [vmem:[%s3653_s8 + $0x374] sm:$0xf0]  ;;  %v3103_v22 = vld [vmem:[%s3653_s8 + $0x32c] sm:$0xf] }
  0x71   : > { %v2644_v23 = vld [vmem:[%s3653_s8 + $0x378] sm:$0xf0]  ;;  %v2714_v24 = vld [vmem:[%s3653_s8 + $0x3c0] sm:$0xf]  ;;  %v3132_v25 = vld [vmem:[%s3653_s8 + $0x40c] sm:$0xf0]  ;;  %v2643_v29 = vor.u32 %v3113_v21, %v2642_v20 }
  0x72   : > { %1380 = vmatpush.bf16.msra.mxu0 %v2795_v18  ;;  %1394 = vmatpush.bf16.msra.mxu1 %v2799_v19  ;;  %v2715_v26 = vor.u32 %v3132_v25, %v2714_v24  ;;  %v3122_v27 = vld [vmem:[%s3653_s8 + $0x3c4] sm:$0xf]  ;;  %v2716_v28 = vld [vmem:[%s3653_s8 + $0x410] sm:$0xf0]  ;;  %v2562_v31 = vld [vmem:[%s3653_s8 + $0x288] sm:$0xf]  ;;  %v2647_v33 = vor.u32 %v3103_v22, %v2644_v23 }
  0x73   : > { %1409 = vmatpush.bf16.msra.mxu2 %v2723_v13  ;;  %v2719_v30 = vor.u32 %v3122_v27, %v2716_v28  ;;  %v3093_v32 = vld [vmem:[%s3653_s8 + $0x2d4] sm:$0xf0]  ;;  %v2634_v34 = vld [vmem:[%s3653_s8 + $0x320] sm:$0xf]  ;;  %v3112_v35 = vld [vmem:[%s3653_s8 + $0x36c] sm:$0xf0] }
  0x74   : > { %1423 = vmatpush.bf16.msra.mxu3 %v2727_v17  ;;  %v3102_v36 = vld [vmem:[%s3653_s8 + $0x324] sm:$0xf]  ;;  %v3083_v37 = vld [vmem:[%s3653_s8 + $0x28c] sm:$0xf]  ;;  %v2564_v38 = vld [vmem:[%s3653_s8 + $0x2d8] sm:$0xf0]  ;;  %v2635_v40 = vor.u32 %v3112_v35, %v2634_v34  ;;  %v2563_v43 = vor.u32 %v3093_v32, %v2562_v31 }
  0x75   : > { %v2636_v39 = vld [vmem:[%s3653_s8 + $0x370] sm:$0xf0]  ;;  %v2554_v42 = vld [vmem:[%s3653_s8 + $0x280] sm:$0xf]  ;;  %v3092_v44 = vld [vmem:[%s3653_s8 + $0x2cc] sm:$0xf0]  ;;  %v2567_v47 = vor.u32 %v3083_v37, %v2564_v38 }
  0x76   : > { %1381 = vmatpush.bf16.msra.mxu0 %v2715_v26  ;;  %1395 = vmatpush.bf16.msra.mxu1 %v2719_v30  ;;  %v2639_v41 = vor.u32 %v3102_v36, %v2636_v39  ;;  %v3082_v45 = vld [vmem:[%s3653_s8 + $0x284] sm:$0xf]  ;;  %v2556_v46 = vld [vmem:[%s3653_s8 + $0x2d0] sm:$0xf0]  ;;  %v2482_v48 = vld [vmem:[%s3653_s8 + $0x1e8] sm:$0xf]  ;;  %v2555_v52 = vor.u32 %v3092_v44, %v2554_v42 }
  0x77   : > { %1410 = vmatpush.bf16.msra.mxu2 %v2643_v29  ;;  %v3073_v49 = vld [vmem:[%s3653_s8 + $0x234] sm:$0xf0]  ;;  %v3063_v50 = vld [vmem:[%s3653_s8 + $0x1ec] sm:$0xf]  ;;  %v2484_v51 = vld [vmem:[%s3653_s8 + $0x238] sm:$0xf0]  ;;  %v2559_v53 = vor.u32 %v3082_v45, %v2556_v46 }
  0x78   : > { %1424 = vmatpush.bf16.msra.mxu3 %v2647_v33  ;;  %v2474_v54 = vld [vmem:[%s3653_s8 + $0x1e0] sm:$0xf]  ;;  %v2483_v55 = vor.u32 %v3073_v49, %v2482_v48  ;;  %v3072_v56 = vld [vmem:[%s3653_s8 + $0x22c] sm:$0xf0]  ;;  %v3062_v57 = vld [vmem:[%s3653_s8 + $0x1e4] sm:$0xf]  ;;  %v2487_v59 = vor.u32 %v3063_v50, %v2484_v51 }
  0x79   : > { %v2476_v58 = vld [vmem:[%s3653_s8 + $0x230] sm:$0xf0]  ;;  %v2402_v60 = vld [vmem:[%s3653_s8 + $0x148] sm:$0xf]  ;;  %v3053_v61 = vld [vmem:[%s3653_s8 + $0x194] sm:$0xf0]  ;;  %v2475_v0 = vor.u32 %v3072_v56, %v2474_v54 }
  0x7a   : > { %1382 = vmatpush.bf16.msra.mxu0 %v2635_v40  ;;  %1396 = vmatpush.bf16.msra.mxu1 %v2639_v41  ;;  %v3043_v62 = vld [vmem:[%s3653_s8 + $0x14c] sm:$0xf]  ;;  %v2404_v63 = vld [vmem:[%s3653_s8 + $0x198] sm:$0xf0]  ;;  %v2479_v1 = vor.u32 %v3062_v57, %v2476_v58  ;;  %v2394_v2 = vld [vmem:[%s3653_s8 + $0x140] sm:$0xf]  ;;  %v2403_v3 = vor.u32 %v3053_v61, %v2402_v60 }
  0x7b   : > { %1411 = vmatpush.bf16.msra.mxu2 %v2563_v43  ;;  %v3052_v4 = vld [vmem:[%s3653_s8 + $0x18c] sm:$0xf0]  ;;  %v3042_v5 = vld [vmem:[%s3653_s8 + $0x144] sm:$0xf]  ;;  %v2396_v6 = vld [vmem:[%s3653_s8 + $0x190] sm:$0xf0]  ;;  %v2407_v7 = vor.u32 %v3043_v62, %v2404_v63 }
  0x7c   : > { %1425 = vmatpush.bf16.msra.mxu3 %v2567_v47  ;;  %v2322_v8 = vld [vmem:[%s3653_s8 + $0xa8] sm:$0xf]  ;;  %v3033_v9 = vld [vmem:[%s3653_s8 + $0xf4] sm:$0xf0]  ;;  %v3023_v10 = vld [vmem:[%s3653_s8 + $0xac] sm:$0xf]  ;;  %v2395_v12 = vor.u32 %v3052_v4, %v2394_v2  ;;  %v2399_v13 = vor.u32 %v3042_v5, %v2396_v6 }
  0x7d   : > { %v2324_v11 = vld [vmem:[%s3653_s8 + $0xf8] sm:$0xf0]  ;;  %v2242_v14 = vld [vmem:[%s3653_s8 + $0x8] sm:$0xf]  ;;  %v2314_v15 = vld [vmem:[%s3653_s8 + $0xa0] sm:$0xf]  ;;  %v2323_v16 = vor.u32 %v3033_v9, %v2322_v8 }
  0x7e   : > { %1383 = vmatpush.bf16.msra.mxu0 %v2555_v52  ;;  %1397 = vmatpush.bf16.msra.mxu1 %v2559_v53  ;;  %v3032_v17 = vld [vmem:[%s3653_s8 + $0xec] sm:$0xf0]  ;;  %v3022_v18 = vld [vmem:[%s3653_s8 + $0xa4] sm:$0xf]  ;;  %v2316_v19 = vld [vmem:[%s3653_s8 + $0xf0] sm:$0xf0]  ;;  %v2327_v20 = vor.u32 %v3023_v10, %v2324_v11 }
  0x7f   : > { %1412 = vmatpush.bf16.msra.mxu2 %v2483_v55  ;;  %v3013_v21 = vld [vmem:[%s3653_s8 + $0x54] sm:$0xf0]  ;;  %v3003_v22 = vld [vmem:[%s3653_s8 + $0xc] sm:$0xf]  ;;  %v2244_v23 = vld [vmem:[%s3653_s8 + $0x58] sm:$0xf0]  ;;  %v2315_v28 = vor.u32 %v3032_v17, %v2314_v15  ;;  %v2319_v29 = vor.u32 %v3022_v18, %v2316_v19 }
  0x80   : > { %1426 = vmatpush.bf16.msra.mxu3 %v2487_v59  ;;  %v2818_v24 = vld [vmem:[%s3653_s8 + $0x478] sm:$0xf]  ;;  %v3155_v25 = vld [vmem:[%s3653_s8 + $0x4c4] sm:$0xf0]  ;;  %v3145_v26 = vld [vmem:[%s3653_s8 + $0x47c] sm:$0xf]  ;;  %v2243_v32 = vor.u32 %v3013_v21, %v2242_v14  ;;  %v2247_v36 = vor.u32 %v3003_v22, %v2244_v23 }
  0x81   : > { %v2820_v27 = vld [vmem:[%s3653_s8 + $0x4c8] sm:$0xf0]  ;;  %v2234_v30 = vld [vmem:[%s3653_s8] sm:$0xf]  ;;  %v3012_v31 = vld [vmem:[%s3653_s8 + $0x4c] sm:$0xf0]  ;;  %v2819_v37 = vor.u32 %v3155_v25, %v2818_v24 }
  0x82   : > { %1384 = vmatpush.bf16.msra.mxu0 %v2475_v0  ;;  %1398 = vmatpush.bf16.msra.mxu1 %v2479_v1  ;;  %v3002_v33 = vld [vmem:[%s3653_s8 + $0x4] sm:$0xf]  ;;  %v2236_v34 = vld [vmem:[%s3653_s8 + $0x50] sm:$0xf0]  ;;  %v2810_v35 = vld [vmem:[%s3653_s8 + $0x470] sm:$0xf]  ;;  %v2823_v41 = vor.u32 %v3145_v26, %v2820_v27  ;;  %v2235_v46 = vor.u32 %v3012_v31, %v2234_v30 }
  0x83   : > { %1413 = vmatpush.bf16.msra.mxu2 %v2403_v3  ;;  %v3154_v38 = vld [vmem:[%s3653_s8 + $0x4bc] sm:$0xf0]  ;;  %v3144_v39 = vld [vmem:[%s3653_s8 + $0x474] sm:$0xf]  ;;  %v2812_v40 = vld [vmem:[%s3653_s8 + $0x4c0] sm:$0xf0]  ;;  %v2239_v47 = vor.u32 %v3002_v33, %v2236_v34 }
  0x84   : > { %1427 = vmatpush.bf16.msra.mxu3 %v2407_v7  ;;  %v2738_v42 = vld [vmem:[%s3653_s8 + $0x3d8] sm:$0xf]  ;;  %v3135_v43 = vld [vmem:[%s3653_s8 + $0x424] sm:$0xf0]  ;;  %v3125_v44 = vld [vmem:[%s3653_s8 + $0x3dc] sm:$0xf]  ;;  %v2811_v49 = vor.u32 %v3154_v38, %v2810_v35  ;;  %v2815_v50 = vor.u32 %v3144_v39, %v2812_v40 }
  0x85   : > { %v2740_v45 = vld [vmem:[%s3653_s8 + $0x428] sm:$0xf0]  ;;  %v417_v48 = vld [vmem:[#allocation2] sm:$0xff]  ;;  %v418_v52 = vld [vmem:[#allocation2 + $0x8] sm:$0xff]  ;;  %v2739_v53 = vor.u32 %v3135_v43, %v2738_v42  ;;  %vm2037_vm0 = vcmask 523264   ;;  %p2997_p7 = scmp.ge.s32.totalorder %s3539_s28, 2 }
  0x86   : > { %1385 = vmatpush.bf16.msra.mxu0 %v2395_v12  ;;  %1399 = vmatpush.bf16.msra.mxu1 %v2399_v13  ;;  %v2730_v51 = vld [vmem:[%s3653_s8 + $0x3d0] sm:$0xf]  ;;  %v3134_v54 = vld [vmem:[%s3653_s8 + $0x41c] sm:$0xf0]  ;;  %v3124_v55 = vld [vmem:[%s3653_s8 + $0x3d4] sm:$0xf]  ;;  %v3766_v57 = vpack.c.bf16 %v418_v52, %v417_v48  ;;  %v2743_v58 = vor.u32 %v3125_v44, %v2740_v45 }
  0x87   : > { %1414 = vmatpush.bf16.msra.mxu2 %v2323_v16  ;;  %v2732_v56 = vld [vmem:[%s3653_s8 + $0x420] sm:$0xf0]  ;;  %v2658_v59 = vld [vmem:[%s3653_s8 + $0x338] sm:$0xf]  ;;  %v3115_v60 = vld [vmem:[%s3653_s8 + $0x384] sm:$0xf0]  ;;  %v2731_v63 = vor.u32 %v3134_v54, %v2730_v51 }
  0x88   : > { %1428 = vmatpush.bf16.msra.mxu3 %v2327_v20  ;;  %v3105_v61 = vld [vmem:[%s3653_s8 + $0x33c] sm:$0xf]  ;;  %v2660_v62 = vld [vmem:[%s3653_s8 + $0x388] sm:$0xf0]  ;;  %v2735_v0 = vor.u32 %v3124_v55, %v2732_v56  ;;  %v2650_v1 = vld [vmem:[%s3653_s8 + $0x330] sm:$0xf]  ;;  %v2659_v2 = vor.u32 %v3115_v60, %v2658_v59 }
  0x89   : > { %v3114_v3 = vld [vmem:[%s3653_s8 + $0x37c] sm:$0xf0]  ;;  %v3104_v4 = vld [vmem:[%s3653_s8 + $0x334] sm:$0xf]  ;;  %v2652_v5 = vld [vmem:[%s3653_s8 + $0x380] sm:$0xf0]  ;;  %v2663_v6 = vor.u32 %v3105_v61, %v2660_v62 }
  0x8a   : > { %1386 = vmatpush.bf16.msra.mxu0 %v2315_v28  ;;  %1400 = vmatpush.bf16.msra.mxu1 %v2319_v29  ;;  %v2578_v7 = vld [vmem:[%s3653_s8 + $0x298] sm:$0xf]  ;;  %v3095_v8 = vld [vmem:[%s3653_s8 + $0x2e4] sm:$0xf0]  ;;  %v3085_v9 = vld [vmem:[%s3653_s8 + $0x29c] sm:$0xf]  ;;  %v2651_v11 = vor.u32 %v3114_v3, %v2650_v1  ;;  %v2655_v12 = vor.u32 %v3104_v4, %v2652_v5 }
  0x8b   : > { %1415 = vmatpush.bf16.msra.mxu2 %v2243_v32  ;;  %v2580_v10 = vld [vmem:[%s3653_s8 + $0x2e8] sm:$0xf0]  ;;  %v2570_v13 = vld [vmem:[%s3653_s8 + $0x290] sm:$0xf]  ;;  %v2579_v14 = vor.u32 %v3095_v8, %v2578_v7  ;;  %v3094_v15 = vld [vmem:[%s3653_s8 + $0x2dc] sm:$0xf0] }
  0x8c   : > { %1429 = vmatpush.bf16.msra.mxu3 %v2247_v36  ;;  %v3084_v16 = vld [vmem:[%s3653_s8 + $0x294] sm:$0xf]  ;;  %v2572_v17 = vld [vmem:[%s3653_s8 + $0x2e0] sm:$0xf0]  ;;  %v2583_v18 = vor.u32 %v3085_v9, %v2580_v10  ;;  %v2498_v19 = vld [vmem:[%s3653_s8 + $0x1f8] sm:$0xf]  ;;  %v2571_v23 = vor.u32 %v3094_v15, %v2570_v13 }
  0x8d   : > { %v3075_v20 = vld [vmem:[%s3653_s8 + $0x244] sm:$0xf0]  ;;  %v3065_v21 = vld [vmem:[%s3653_s8 + $0x1fc] sm:$0xf]  ;;  %v2500_v22 = vld [vmem:[%s3653_s8 + $0x248] sm:$0xf0]  ;;  %v2575_v24 = vor.u32 %v3084_v16, %v2572_v17 }
  0x8e   : > { %1387 = vmatpush.bf16.msra.mxu0 %v2235_v46  ;;  %1401 = vmatpush.bf16.msra.mxu1 %v2239_v47  ;;  %v2490_v25 = vld [vmem:[%s3653_s8 + $0x1f0] sm:$0xf]  ;;  %v2499_v26 = vor.u32 %v3075_v20, %v2498_v19  ;;  %v3074_v27 = vld [vmem:[%s3653_s8 + $0x23c] sm:$0xf0]  ;;  %v3064_v28 = vld [vmem:[%s3653_s8 + $0x1f4] sm:$0xf]  ;;  %v2503_v30 = vor.u32 %v3065_v21, %v2500_v22 }
  0x8f   : > { %1464 = vmatpush.bf16.msrb.mxu2 %v2819_v37  ;;  %1430 = vmatmul.bf16.vlgmr.msra.gmra.mxu3 %v3766_v57  ;;  %v2492_v29 = vld [vmem:[%s3653_s8 + $0x240] sm:$0xf0]  ;;  %v2418_v31 = vld [vmem:[%s3653_s8 + $0x158] sm:$0xf]  ;;  %v3055_v32 = vld [vmem:[%s3653_s8 + $0x1a4] sm:$0xf0]  ;;  %v2491_v35 = vor.u32 %v3074_v27, %v2490_v25 }
  0x90   : > { %1478 = vmatpush.bf16.msrb.mxu3 %v2823_v41  ;;  %1416 = vmatmul.bf16.vlgmr.msra.gmra.mxu2 %v3766_v57  ;;  %v3045_v33 = vld [vmem:[%s3653_s8 + $0x15c] sm:$0xf]  ;;  %v2420_v34 = vld [vmem:[%s3653_s8 + $0x1a8] sm:$0xf0]  ;;  %v2495_v36 = vor.u32 %v3064_v28, %v2492_v29  ;;  %v2410_v37 = vld [vmem:[%s3653_s8 + $0x150] sm:$0xf]  ;;  %v2419_v38 = vor.u32 %v3055_v32, %v2418_v31 }
  0x91   : > { %1388 = vmatmul.bf16.vlgmr.msra.gmra.mxu0 %v3766_v57  ;;  %1402 = vmatmul.bf16.vlgmr.msra.gmra.mxu1 %v3766_v57  ;;  %v3054_v39 = vld [vmem:[%s3653_s8 + $0x19c] sm:$0xf0]  ;;  %v3044_v40 = vld [vmem:[%s3653_s8 + $0x154] sm:$0xf]  ;;  %v2412_v41 = vld [vmem:[%s3653_s8 + $0x1a0] sm:$0xf0]  ;;  %v2423_v42 = vor.u32 %v3045_v33, %v2420_v34 }
  0x92   : > { %1436 = vmatpush.bf16.msrb.mxu0 %v2811_v49  ;;  %1450 = vmatpush.bf16.msrb.mxu1 %v2815_v50  ;;  %v2338_v43 = vld [vmem:[%s3653_s8 + $0xb8] sm:$0xf]  ;;  %v3035_v44 = vld [vmem:[%s3653_s8 + $0x104] sm:$0xf0]  ;;  %v3025_v45 = vld [vmem:[%s3653_s8 + $0xbc] sm:$0xf]  ;;  %v2411_v47 = vor.u32 %v3054_v39, %v2410_v37  ;;  %v2415_v48 = vor.u32 %v3044_v40, %v2412_v41 }
  0x93   : > { %1465 = vmatpush.bf16.msrb.mxu2 %v2739_v53  ;;  %v2340_v46 = vld [vmem:[%s3653_s8 + $0x108] sm:$0xf0]  ;;  %v2330_v49 = vld [vmem:[%s3653_s8 + $0xb0] sm:$0xf]  ;;  %v2339_v50 = vor.u32 %v3035_v44, %v2338_v43  ;;  %v3034_v51 = vld [vmem:[%s3653_s8 + $0xfc] sm:$0xf0] }
  0x94   : > { %1479 = vmatpush.bf16.msrb.mxu3 %v2743_v58  ;;  %v3024_v52 = vld [vmem:[%s3653_s8 + $0xb4] sm:$0xf]  ;;  %v2332_v53 = vld [vmem:[%s3653_s8 + $0x100] sm:$0xf0]  ;;  %v2343_v54 = vor.u32 %v3025_v45, %v2340_v46  ;;  %v2258_v55 = vld [vmem:[%s3653_s8 + $0x18] sm:$0xf] }
  0x95   : > { %v3015_v56 = vld [vmem:[%s3653_s8 + $0x64] sm:$0xf0]  ;;  %v3005_v58 = vld [vmem:[%s3653_s8 + $0x1c] sm:$0xf]  ;;  %v2260_v59 = vld [vmem:[%s3653_s8 + $0x68] sm:$0xf0]  ;;  %v2335_v1 = vor.u32 %v3024_v52, %v2332_v53 }
  0x96   : > { %1437 = vmatpush.bf16.msrb.mxu0 %v2731_v63  ;;  %1451 = vmatpush.bf16.msrb.mxu1 %v2735_v0  ;;  %v2834_v60 = vld [vmem:[%s3653_s8 + $0x488] sm:$0xf]  ;;  %v3157_v61 = vld [vmem:[%s3653_s8 + $0x4d4] sm:$0xf0]  ;;  %v3147_v62 = vld [vmem:[%s3653_s8 + $0x48c] sm:$0xf]  ;;  %v2331_v0 = vor.u32 %v3034_v51, %v2330_v49 }
  0x97   : > { %1466 = vmatpush.bf16.msrb.mxu2 %v2659_v2  ;;  %v2836_v63 = vld [vmem:[%s3653_s8 + $0x4d8] sm:$0xf0]  ;;  %v2259_v2 = vor.u32 %v3015_v56, %v2258_v55  ;;  %v2754_v3 = vld [vmem:[%s3653_s8 + $0x3e8] sm:$0xf]  ;;  %v2250_v4 = vld [vmem:[%s3653_s8 + $0x10] sm:$0xf]  ;;  %v2835_v7 = vor.u32 %v3157_v61, %v2834_v60 }
  0x98   : > { %1480 = vmatpush.bf16.msrb.mxu3 %v2663_v6  ;;  %v3014_v5 = vld [vmem:[%s3653_s8 + $0x5c] sm:$0xf0]  ;;  %v2263_v6 = vor.u32 %v3005_v58, %v2260_v59  ;;  %v3137_v8 = vld [vmem:[%s3653_s8 + $0x434] sm:$0xf0]  ;;  %v3004_v9 = vld [vmem:[%s3653_s8 + $0x14] sm:$0xf] }
  0x99   : > { %v2252_v10 = vld [vmem:[%s3653_s8 + $0x60] sm:$0xf0]  ;;  %v2826_v13 = vld [vmem:[%s3653_s8 + $0x480] sm:$0xf]  ;;  %v2756_v15 = vld [vmem:[%s3653_s8 + $0x438] sm:$0xf0]  ;;  %v2251_v16 = vor.u32 %v3014_v5, %v2250_v4  ;;  %v2755_v20 = vor.u32 %v3137_v8, %v2754_v3 }
  0x9a   : > { %1438 = vmatpush.bf16.msrb.mxu0 %v2651_v11  ;;  %1452 = vmatpush.bf16.msrb.mxu1 %v2655_v12  ;;  %v2839_v11 = vor.u32 %v3147_v62, %v2836_v63  ;;  %v3127_v12 = vld [vmem:[%s3653_s8 + $0x3ec] sm:$0xf]  ;;  %v3146_v17 = vld [vmem:[%s3653_s8 + $0x484] sm:$0xf]  ;;  %v2255_v19 = vor.u32 %v3004_v9, %v2252_v10  ;;  %v2674_v22 = vld [vmem:[%s3653_s8 + $0x348] sm:$0xf] }
  0x9b   : > { %1467 = vmatpush.bf16.msrb.mxu2 %v2579_v14  ;;  %v3156_v14 = vld [vmem:[%s3653_s8 + $0x4cc] sm:$0xf0]  ;;  %v2746_v27 = vld [vmem:[%s3653_s8 + $0x3e0] sm:$0xf]  ;;  %v2676_v29 = vld [vmem:[%s3653_s8 + $0x398] sm:$0xf0] }
  0x9c   : > { %1481 = vmatpush.bf16.msrb.mxu3 %v2583_v18  ;;  %v2828_v18 = vld [vmem:[%s3653_s8 + $0x4d0] sm:$0xf0]  ;;  %v2827_v21 = vor.u32 %v3156_v14, %v2826_v13  ;;  %v3136_v28 = vld [vmem:[%s3653_s8 + $0x42c] sm:$0xf0]  ;;  %v2594_v34 = vld [vmem:[%s3653_s8 + $0x2a8] sm:$0xf] }
  0x9d   : > { %v2831_v25 = vor.u32 %v3146_v17, %v2828_v18  ;;  %v2748_v31 = vld [vmem:[%s3653_s8 + $0x430] sm:$0xf0]  ;;  %v2747_v33 = vor.u32 %v3136_v28, %v2746_v27  ;;  %v2666_v39 = vld [vmem:[%s3653_s8 + $0x340] sm:$0xf]  ;;  %v3116_v40 = vld [vmem:[%s3653_s8 + $0x38c] sm:$0xf0] }
  0x9e   : > { %1439 = vmatpush.bf16.msrb.mxu0 %v2571_v23  ;;  %1453 = vmatpush.bf16.msrb.mxu1 %v2575_v24  ;;  %v3117_v23 = vld [vmem:[%s3653_s8 + $0x394] sm:$0xf0]  ;;  %v2759_v24 = vor.u32 %v3127_v12, %v2756_v15  ;;  %v2596_v41 = vld [vmem:[%s3653_s8 + $0x2f8] sm:$0xf0]  ;;  %v2668_v43 = vld [vmem:[%s3653_s8 + $0x390] sm:$0xf0]  ;;  %v2667_v45 = vor.u32 %v3116_v40, %v2666_v39 }
  0x9f   : > { %1468 = vmatpush.bf16.msrb.mxu2 %v2499_v26  ;;  %v3107_v26 = vld [vmem:[%s3653_s8 + $0x34c] sm:$0xf]  ;;  %v2675_v32 = vor.u32 %v3117_v23, %v2674_v22  ;;  %v2514_v46 = vld [vmem:[%s3653_s8 + $0x208] sm:$0xf]  ;;  %v2586_v51 = vld [vmem:[%s3653_s8 + $0x2a0] sm:$0xf] }
  0xa0   : > { %1482 = vmatpush.bf16.msrb.mxu3 %v2503_v30  ;;  %v3126_v30 = vld [vmem:[%s3653_s8 + $0x3e4] sm:$0xf]  ;;  %v3096_v52 = vld [vmem:[%s3653_s8 + $0x2ec] sm:$0xf0]  ;;  %v2516_v53 = vld [vmem:[%s3653_s8 + $0x258] sm:$0xf0] }
  0xa1   : > { %v2751_v37 = vor.u32 %v3126_v30, %v2748_v31  ;;  %v2588_v55 = vld [vmem:[%s3653_s8 + $0x2f0] sm:$0xf0]  ;;  %v2587_v58 = vor.u32 %v3096_v52, %v2586_v51  ;;  %v2434_v59 = vld [vmem:[%s3653_s8 + $0x168] sm:$0xf]  ;;  %v3057_v60 = vld [vmem:[%s3653_s8 + $0x1b4] sm:$0xf0] }
  0xa2   : > { %1440 = vmatpush.bf16.msrb.mxu0 %v2491_v35  ;;  %1454 = vmatpush.bf16.msrb.mxu1 %v2495_v36  ;;  %v3097_v35 = vld [vmem:[%s3653_s8 + $0x2f4] sm:$0xf0]  ;;  %v2679_v36 = vor.u32 %v3107_v26, %v2676_v29  ;;  %v3047_v63 = vld [vmem:[%s3653_s8 + $0x16c] sm:$0xf]  ;;  %v3066_v3 = vld [vmem:[%s3653_s8 + $0x204] sm:$0xf]  ;;  %v2435_v5 = vor.u32 %v3057_v60, %v2434_v59 }
  0xa3   : > { %1469 = vmatpush.bf16.msrb.mxu2 %v2419_v38  ;;  %v3087_v38 = vld [vmem:[%s3653_s8 + $0x2ac] sm:$0xf]  ;;  %v2595_v44 = vor.u32 %v3097_v35, %v2594_v34  ;;  %v2508_v4 = vld [vmem:[%s3653_s8 + $0x250] sm:$0xf0]  ;;  %v3037_v8 = vld [vmem:[%s3653_s8 + $0x114] sm:$0xf0] }
  0xa4   : > { %1483 = vmatpush.bf16.msrb.mxu3 %v2423_v42  ;;  %v3106_v42 = vld [vmem:[%s3653_s8 + $0x344] sm:$0xf]  ;;  %v3027_v9 = vld [vmem:[%s3653_s8 + $0xcc] sm:$0xf]  ;;  %v2356_v12 = vld [vmem:[%s3653_s8 + $0x118] sm:$0xf0] }
  0xa5   : > { %v2671_v49 = vor.u32 %v3106_v42, %v2668_v43  ;;  %v2426_v13 = vld [vmem:[%s3653_s8 + $0x160] sm:$0xf]  ;;  %v3056_v14 = vld [vmem:[%s3653_s8 + $0x1ac] sm:$0xf0]  ;;  %v3046_v15 = vld [vmem:[%s3653_s8 + $0x164] sm:$0xf]  ;;  %v2359_v22 = vor.u32 %v3027_v9, %v2356_v12 }
  0xa6   : > { %1441 = vmatpush.bf16.msrb.mxu0 %v2411_v47  ;;  %1455 = vmatpush.bf16.msrb.mxu1 %v2415_v48  ;;  %v3077_v47 = vld [vmem:[%s3653_s8 + $0x254] sm:$0xf0]  ;;  %v2599_v48 = vor.u32 %v3087_v38, %v2596_v41  ;;  %v2427_v18 = vor.u32 %v3056_v14, %v2426_v13  ;;  %v3036_v26 = vld [vmem:[%s3653_s8 + $0x10c] sm:$0xf0]  ;;  %v3159_v28 = vld [vmem:[%s3653_s8 + $0x4e4] sm:$0xf0] }
  0xa7   : > { %1470 = vmatpush.bf16.msrb.mxu2 %v2339_v50  ;;  %v3067_v50 = vld [vmem:[%s3653_s8 + $0x20c] sm:$0xf]  ;;  %v2515_v56 = vor.u32 %v3077_v47, %v2514_v46  ;;  %v2850_v27 = vld [vmem:[%s3653_s8 + $0x498] sm:$0xf]  ;;  %v3149_v29 = vld [vmem:[%s3653_s8 + $0x49c] sm:$0xf] }
  0xa8   : > { %1484 = vmatpush.bf16.msrb.mxu3 %v2343_v54  ;;  %v3086_v54 = vld [vmem:[%s3653_s8 + $0x2a4] sm:$0xf]  ;;  %v2519_v61 = vor.u32 %v3067_v50, %v2516_v53  ;;  %v2852_v30 = vld [vmem:[%s3653_s8 + $0x4e8] sm:$0xf0]  ;;  %v2770_v35 = vld [vmem:[%s3653_s8 + $0x3f8] sm:$0xf] }
  0xa9   : > { %v2591_v62 = vor.u32 %v3086_v54, %v2588_v55  ;;  %v3026_v31 = vld [vmem:[%s3653_s8 + $0xc4] sm:$0xf]  ;;  %v3139_v38 = vld [vmem:[%s3653_s8 + $0x444] sm:$0xf0]  ;;  %v2266_v39 = vld [vmem:[%s3653_s8 + $0x20] sm:$0xf]  ;;  %v2855_v41 = vor.u32 %v3149_v29, %v2852_v30 }
  0xaa   : > { %1442 = vmatpush.bf16.msrb.mxu0 %v2331_v0  ;;  %1456 = vmatpush.bf16.msrb.mxu1 %v2335_v1  ;;  %v2506_v0 = vld [vmem:[%s3653_s8 + $0x200] sm:$0xf]  ;;  %v3076_v1 = vld [vmem:[%s3653_s8 + $0x24c] sm:$0xf0]  ;;  %v3129_v43 = vld [vmem:[%s3653_s8 + $0x3fc] sm:$0xf]  ;;  %v2771_v52 = vor.u32 %v3139_v38, %v2770_v35 }
  0xab   : > { %1471 = vmatpush.bf16.msrb.mxu2 %v2259_v2  ;;  %v2436_v2 = vld [vmem:[%s3653_s8 + $0x1b8] sm:$0xf0]  ;;  %v3016_v40 = vld [vmem:[%s3653_s8 + $0x6c] sm:$0xf0]  ;;  %v2772_v46 = vld [vmem:[%s3653_s8 + $0x448] sm:$0xf0] }
  0xac   : > { %1485 = vmatpush.bf16.msrb.mxu3 %v2263_v6  ;;  %v2507_v6 = vor.u32 %v3076_v1, %v2506_v0  ;;  %v2439_v10 = vor.u32 %v3047_v63, %v2436_v2  ;;  %v3006_v47 = vld [vmem:[%s3653_s8 + $0x24] sm:$0xf]  ;;  %v3148_v50 = vld [vmem:[%s3653_s8 + $0x494] sm:$0xf]  ;;  %v2690_v54 = vld [vmem:[%s3653_s8 + $0x358] sm:$0xf]  ;;  %v2775_v55 = vor.u32 %v3129_v43, %v2772_v46 }
  0xad   : > { %v2844_v51 = vld [vmem:[%s3653_s8 + $0x4e0] sm:$0xf0]  ;;  %v2762_v59 = vld [vmem:[%s3653_s8 + $0x3f0] sm:$0xf]  ;;  %v3138_v60 = vld [vmem:[%s3653_s8 + $0x43c] sm:$0xf0] }
  0xae   : > { %1472 = vmatmul.bf16.vlgmr.msrb.gmra.mxu2 %v3766_v57  ;;  %1443 = vmatpush.bf16.msrb.mxu0 %v2251_v16  ;;  %v2428_v16 = vld [vmem:[%s3653_s8 + $0x1b0] sm:$0xf0]  ;;  %v2692_v63 = vld [vmem:[%s3653_s8 + $0x3a8] sm:$0xf0]  ;;  %v2764_v1 = vld [vmem:[%s3653_s8 + $0x440] sm:$0xf0] }
  0xaf   : > { %1520 = vmatpush.bf16.msra.mxu2 %v2835_v7  ;;  %1486 = vmatmul.bf16.vlgmr.msrb.gmra.mxu3 %v3766_v57  ;;  %v2354_v7 = vld [vmem:[%s3653_s8 + $0xc8] sm:$0xf]  ;;  %v2431_v23 = vor.u32 %v3046_v15, %v2428_v16  ;;  %v3128_v0 = vld [vmem:[%s3653_s8 + $0x3f4] sm:$0xf]  ;;  %v2684_v13 = vld [vmem:[%s3653_s8 + $0x3a0] sm:$0xf0] }
  0xb0   : > { %1534 = vmatpush.bf16.msra.mxu3 %v2839_v11  ;;  %1457 = vmatpush.bf16.msrb.mxu1 %v2255_v19  ;;  %v2511_v11 = vor.u32 %v3066_v3, %v2508_v4  ;;  %v2355_v17 = vor.u32 %v3037_v8, %v2354_v7  ;;  %v2274_v19 = vld [vmem:[%s3653_s8 + $0x28] sm:$0xf]  ;;  %v2763_v3 = vor.u32 %v3138_v60, %v2762_v59  ;;  %v2610_v4 = vld [vmem:[%s3653_s8 + $0x2b8] sm:$0xf]  ;;  %v2682_v7 = vld [vmem:[%s3653_s8 + $0x350] sm:$0xf] }
  0xb1   : > { %1444 = vmatmul.bf16.vlgmr.msrb.gmra.mxu0 %v3766_v57  ;;  %v3118_v8 = vld [vmem:[%s3653_s8 + $0x39c] sm:$0xf0]  ;;  %v2767_v9 = vor.u32 %v3128_v0, %v2764_v1  ;;  %v3108_v12 = vld [vmem:[%s3653_s8 + $0x354] sm:$0xf]  ;;  %v2530_v16 = vld [vmem:[%s3653_s8 + $0x218] sm:$0xf] }
  0xb2   : > { %1492 = vmatpush.bf16.msra.mxu0 %v2827_v21  ;;  %v3007_v21 = vld [vmem:[%s3653_s8 + $0x2c] sm:$0xf]  ;;  %v2683_v15 = vor.u32 %v3118_v8, %v2682_v7  ;;  %v3059_v30 = vld [vmem:[%s3653_s8 + $0x1c4] sm:$0xf0]  ;;  %v2442_v43 = vld [vmem:[%s3653_s8 + $0x170] sm:$0xf] }
  0xb3   : > { %1521 = vmatpush.bf16.msra.mxu2 %v2755_v20  ;;  %1458 = vmatmul.bf16.vlgmr.msrb.gmra.mxu1 %v3766_v57  ;;  %v3017_v20 = vld [vmem:[%s3653_s8 + $0x74] sm:$0xf0]  ;;  %v2452_v35 = vld [vmem:[%s3653_s8 + $0x1c8] sm:$0xf0]  ;;  %v3029_v46 = vld [vmem:[%s3653_s8 + $0xdc] sm:$0xf] }
  0xb4   : > { %1535 = vmatpush.bf16.msra.mxu3 %v2759_v24  ;;  %1506 = vmatpush.bf16.msra.mxu1 %v2831_v25  ;;  %v2276_v24 = vld [vmem:[%s3653_s8 + $0x78] sm:$0xf0]  ;;  %v2346_v25 = vld [vmem:[%s3653_s8 + $0xc0] sm:$0xf]  ;;  %v3028_v1 = vld [vmem:[%s3653_s8 + $0xd4] sm:$0xf] }
  0xb5   : > { %v2347_v34 = vor.u32 %v3036_v26, %v2346_v25  ;;  %v2604_v25 = vld [vmem:[%s3653_s8 + $0x300] sm:$0xf0]  ;;  %v3038_v59 = vld [vmem:[%s3653_s8 + $0x11c] sm:$0xf0]  ;;  %v2868_v0 = vld [vmem:[%s3653_s8 + $0x4f8] sm:$0xf0] }
  0xb6   : > { %1493 = vmatpush.bf16.msra.mxu0 %v2747_v33  ;;  %v2275_v33 = vor.u32 %v3017_v20, %v2274_v19  ;;  %v2602_v19 = vld [vmem:[%s3653_s8 + $0x2b0] sm:$0xf]  ;;  %v3098_v20 = vld [vmem:[%s3653_s8 + $0x2fc] sm:$0xf0]  ;;  %v3141_v8 = vld [vmem:[%s3653_s8 + $0x454] sm:$0xf0] }
  0xb7   : > { %1522 = vmatpush.bf16.msra.mxu2 %v2675_v32  ;;  %v2348_v32 = vld [vmem:[%s3653_s8 + $0x110] sm:$0xf0] }
  0xb8   : > { %1536 = vmatpush.bf16.msra.mxu3 %v2679_v36  ;;  %1507 = vmatpush.bf16.msra.mxu1 %v2751_v37  ;;  %v2279_v36 = vor.u32 %v3007_v21, %v2276_v24  ;;  %v2851_v37 = vor.u32 %v3159_v28, %v2850_v27  ;;  %v2351_v42 = vor.u32 %v3026_v31, %v2348_v32  ;;  %v3088_v24 = vld [vmem:[%s3653_s8 + $0x2b4] sm:$0xf]  ;;  %v2450_v28 = vld [vmem:[%s3653_s8 + $0x178] sm:$0xf]  ;;  %v2522_v31 = vld [vmem:[%s3653_s8 + $0x210] sm:$0xf] }
  0xb9   : > { %v2687_v21 = vor.u32 %v3108_v12, %v2684_v13  ;;  %v2603_v27 = vor.u32 %v3098_v20, %v2602_v19  ;;  %v3078_v32 = vld [vmem:[%s3653_s8 + $0x25c] sm:$0xf0]  ;;  %v2451_v38 = vor.u32 %v3059_v30, %v2450_v28  ;;  %v3131_v13 = vld [vmem:[%s3653_s8 + $0x40c] sm:$0xf]  ;;  %v3150_v20 = vld [vmem:[%s3653_s8 + $0x4a4] sm:$0xf] }
  0xba   : > { %1494 = vmatpush.bf16.msra.mxu0 %v2667_v45  ;;  %v3158_v45 = vld [vmem:[%s3653_s8 + $0x4dc] sm:$0xf0] }
  0xbb   : > { %1523 = vmatpush.bf16.msra.mxu2 %v2595_v44  ;;  %v2842_v44 = vld [vmem:[%s3653_s8 + $0x490] sm:$0xf]  ;;  %v2778_v28 = vld [vmem:[%s3653_s8 + $0x400] sm:$0xf] }
  0xbc   : > { %1537 = vmatpush.bf16.msra.mxu3 %v2599_v48  ;;  %1508 = vmatpush.bf16.msra.mxu1 %v2671_v49  ;;  %v2268_v48 = vld [vmem:[%s3653_s8 + $0x70] sm:$0xf0]  ;;  %v2267_v49 = vor.u32 %v3016_v40, %v2266_v39  ;;  %v2843_v53 = vor.u32 %v3158_v45, %v2842_v44  ;;  %v2523_v39 = vor.u32 %v3078_v32, %v2522_v31  ;;  %v2370_v40 = vld [vmem:[%s3653_s8 + $0xd8] sm:$0xf]  ;;  %v3058_v44 = vld [vmem:[%s3653_s8 + $0x1bc] sm:$0xf0] }
  0xbd   : > { %v3111_v31 = vld [vmem:[%s3653_s8 + $0x36c] sm:$0xf]  ;;  %v2708_v32 = vld [vmem:[%s3653_s8 + $0x3b8] sm:$0xf0] }
  0xbe   : > { %1495 = vmatpush.bf16.msra.mxu0 %v2587_v58  ;;  %v3119_v58 = vld [vmem:[%s3653_s8 + $0x3a4] sm:$0xf0] }
  0xbf   : > { %1524 = vmatpush.bf16.msra.mxu2 %v2515_v56  ;;  %v2271_v56 = vor.u32 %v3006_v47, %v2268_v48  ;;  %v2691_v2 = vor.u32 %v3119_v58, %v2690_v54  ;;  %v2372_v47 = vld [vmem:[%s3653_s8 + $0x128] sm:$0xf0]  ;;  %v3048_v48 = vld [vmem:[%s3653_s8 + $0x174] sm:$0xf]  ;;  %v3009_v54 = vld [vmem:[%s3653_s8 + $0x3c] sm:$0xf] }
  0xc0   : > { %1538 = vmatpush.bf16.msra.mxu3 %v2519_v61  ;;  %1509 = vmatpush.bf16.msra.mxu1 %v2591_v62  ;;  %v2847_v61 = vor.u32 %v3148_v50, %v2844_v51  ;;  %v3109_v62 = vld [vmem:[%s3653_s8 + $0x35c] sm:$0xf]  ;;  %v2443_v51 = vor.u32 %v3058_v44, %v2442_v43  ;;  %v2362_v58 = vld [vmem:[%s3653_s8 + $0xd0] sm:$0xf]  ;;  %v3091_v43 = vld [vmem:[%s3653_s8 + $0x2cc] sm:$0xf] }
  0xc1   : > { %v2628_v44 = vld [vmem:[%s3653_s8 + $0x318] sm:$0xf0] }
  0xc2   : > { %1496 = vmatpush.bf16.msra.mxu0 %v2507_v6  ;;  %v3099_v6 = vld [vmem:[%s3653_s8 + $0x304] sm:$0xf0] }
  0xc3   : > { %1525 = vmatpush.bf16.msra.mxu2 %v2435_v5  ;;  %v2695_v5 = vor.u32 %v3109_v62, %v2692_v63  ;;  %v2611_v14 = vor.u32 %v3099_v6, %v2610_v4  ;;  %v3161_v62 = vld [vmem:[%s3653_s8 + $0x4f4] sm:$0xf0]  ;;  %v3151_v63 = vld [vmem:[%s3653_s8 + $0x4ac] sm:$0xf]  ;;  %v2363_v4 = vor.u32 %v3038_v59, %v2362_v58  ;;  %v3090_v58 = vld [vmem:[%s3653_s8 + $0x2c4] sm:$0xf] }
  0xc4   : > { %1539 = vmatpush.bf16.msra.mxu3 %v2439_v10  ;;  %1510 = vmatpush.bf16.msra.mxu1 %v2511_v11  ;;  %v3089_v10 = vld [vmem:[%s3653_s8 + $0x2bc] sm:$0xf]  ;;  %v2612_v11 = vld [vmem:[%s3653_s8 + $0x308] sm:$0xf0]  ;;  %v2620_v59 = vld [vmem:[%s3653_s8 + $0x310] sm:$0xf0] }
  0xc6   : > { %1497 = vmatpush.bf16.msra.mxu0 %v2427_v18  ;;  %v3079_v18 = vld [vmem:[%s3653_s8 + $0x264] sm:$0xf0] }
  0xc7   : > { %1526 = vmatpush.bf16.msra.mxu2 %v2355_v17  ;;  %v2615_v17 = vor.u32 %v3089_v10, %v2612_v11  ;;  %v2531_v26 = vor.u32 %v3079_v18, %v2530_v16  ;;  %v3018_v10 = vld [vmem:[%s3653_s8 + $0x7c] sm:$0xf0]  ;;  %v2871_v11 = vor.u32 %v3151_v63, %v2868_v0  ;;  %v2788_v16 = vld [vmem:[%s3653_s8 + $0x458] sm:$0xf0]  ;;  %v2284_v18 = vld [vmem:[%s3653_s8 + $0x80] sm:$0xf0] }
  0xc8   : > { %1540 = vmatpush.bf16.msra.mxu3 %v2359_v22  ;;  %1511 = vmatpush.bf16.msra.mxu1 %v2431_v23  ;;  %v3069_v22 = vld [vmem:[%s3653_s8 + $0x21c] sm:$0xf]  ;;  %v2532_v23 = vld [vmem:[%s3653_s8 + $0x268] sm:$0xf0]  ;;  %v3061_v0 = vld [vmem:[%s3653_s8 + $0x1d4] sm:$0xf0] }
  0xc9   : > { %v2535_v29 = vor.u32 %v3069_v22, %v2532_v23 }
  0xca   : > { %1498 = vmatpush.bf16.msra.mxu0 %v2347_v34  ;;  %v3049_v34 = vld [vmem:[%s3653_s8 + $0x17c] sm:$0xf] }
  0xcb   : > { %1527 = vmatpush.bf16.msra.mxu2 %v2275_v33  ;;  %v2607_v33 = vor.u32 %v3088_v24, %v2604_v25  ;;  %v2706_v24 = vld [vmem:[%s3653_s8 + $0x368] sm:$0xf]  ;;  %v2791_v25 = vor.u32 %v3131_v13, %v2788_v16  ;;  %v2458_v13 = vld [vmem:[%s3653_s8 + $0x180] sm:$0xf]  ;;  %v3031_v16 = vld [vmem:[%s3653_s8 + $0xec] sm:$0xf] }
  0xcc   : > { %1541 = vmatpush.bf16.msra.mxu3 %v2279_v36  ;;  %1512 = vmatpush.bf16.msra.mxu1 %v2351_v42  ;;  %v3068_v36 = vld [vmem:[%s3653_s8 + $0x214] sm:$0xf]  ;;  %v3039_v42 = vld [vmem:[%s3653_s8 + $0x124] sm:$0xf0] }
  0xcd   : > { %v2371_v50 = vor.u32 %v3039_v42, %v2370_v40  ;;  %v2698_v40 = vld [vmem:[%s3653_s8 + $0x360] sm:$0xf] }
  0xce   : > { %1528 = vmatmul.bf16.vlgmr.msra.gmra.mxu2 %v3766_v57  ;;  %1499 = vmatpush.bf16.msra.mxu0 %v2267_v49  ;;  %v2444_v49 = vld [vmem:[%s3653_s8 + $0x1c0] sm:$0xf0] }
  0xcf   : > { %1576 = vmatpush.bf16.msrb.mxu2 %v2851_v37  ;;  %1542 = vmatmul.bf16.vlgmr.msra.gmra.mxu3 %v3766_v57  ;;  %v2524_v37 = vld [vmem:[%s3653_s8 + $0x260] sm:$0xf0]  ;;  %v2447_v60 = vor.u32 %v3048_v48, %v2444_v49  ;;  %v2546_v49 = vld [vmem:[%s3653_s8 + $0x228] sm:$0xf] }
  0xd0   : > { %1590 = vmatpush.bf16.msrb.mxu3 %v2855_v41  ;;  %1513 = vmatpush.bf16.msra.mxu1 %v2271_v56  ;;  %v2455_v41 = vor.u32 %v3049_v34, %v2452_v35  ;;  %v2527_v45 = vor.u32 %v3068_v36, %v2524_v37  ;;  %v2292_v56 = vld [vmem:[%s3653_s8 + $0x88] sm:$0xf0]  ;;  %v2780_v34 = vld [vmem:[%s3653_s8 + $0x450] sm:$0xf0]  ;;  %v2626_v37 = vld [vmem:[%s3653_s8 + $0x2c8] sm:$0xf] }
  0xd1   : > { %1500 = vmatmul.bf16.vlgmr.msra.gmra.mxu0 %v3766_v57  ;;  %v2295_v6 = vor.u32 %v3009_v54, %v2292_v56  ;;  %v2548_v56 = vld [vmem:[%s3653_s8 + $0x278] sm:$0xf0] }
  0xd2   : > { %1548 = vmatpush.bf16.msrb.mxu0 %v2843_v53  ;;  %v3019_v53 = vld [vmem:[%s3653_s8 + $0x84] sm:$0xf0] }
  0xd3   : > { %1577 = vmatpush.bf16.msrb.mxu2 %v2771_v52  ;;  %1514 = vmatmul.bf16.vlgmr.msra.gmra.mxu1 %v3766_v57  ;;  %v2290_v52 = vld [vmem:[%s3653_s8 + $0x38] sm:$0xf] }
  0xd4   : > { %1591 = vmatpush.bf16.msrb.mxu3 %v2775_v55  ;;  %1562 = vmatpush.bf16.msrb.mxu1 %v2847_v61  ;;  %v2375_v55 = vor.u32 %v3029_v46, %v2372_v47  ;;  %v2866_v61 = vld [vmem:[%s3653_s8 + $0x4a8] sm:$0xf]  ;;  %v2700_v46 = vld [vmem:[%s3653_s8 + $0x3b0] sm:$0xf0] }
  0xd5   : > { %v2867_v7 = vor.u32 %v3161_v62, %v2866_v61  ;;  %v2466_v62 = vld [vmem:[%s3653_s8 + $0x188] sm:$0xf] }
  0xd6   : > { %1549 = vmatpush.bf16.msrb.mxu0 %v2763_v3  ;;  %v2291_v3 = vor.u32 %v3019_v53, %v2290_v52  ;;  %v2618_v52 = vld [vmem:[%s3653_s8 + $0x2c0] sm:$0xf]  ;;  %v3100_v53 = vld [vmem:[%s3653_s8 + $0x30c] sm:$0xf0] }
  0xd7   : > { %1578 = vmatpush.bf16.msrb.mxu2 %v2691_v2  ;;  %v2364_v2 = vld [vmem:[%s3653_s8 + $0x120] sm:$0xf0]  ;;  %v2619_v61 = vor.u32 %v3100_v53, %v2618_v52 }
  0xd8   : > { %1592 = vmatpush.bf16.msrb.mxu3 %v2695_v5  ;;  %1563 = vmatpush.bf16.msrb.mxu1 %v2767_v9  ;;  %v2786_v5 = vld [vmem:[%s3653_s8 + $0x408] sm:$0xf]  ;;  %v2282_v9 = vld [vmem:[%s3653_s8 + $0x30] sm:$0xf]  ;;  %v2367_v12 = vor.u32 %v3028_v1, %v2364_v2  ;;  %v2538_v1 = vld [vmem:[%s3653_s8 + $0x220] sm:$0xf] }
  0xd9   : > { %v2283_v19 = vor.u32 %v3018_v10, %v2282_v9  ;;  %v2787_v22 = vor.u32 %v3141_v8, %v2786_v5  ;;  %v3080_v2 = vld [vmem:[%s3653_s8 + $0x26c] sm:$0xf0]  ;;  %v2468_v5 = vld [vmem:[%s3653_s8 + $0x1d8] sm:$0xf0]  ;;  %v2467_v8 = vor.u32 %v3061_v0, %v2466_v62  ;;  %v2386_v10 = vld [vmem:[%s3653_s8 + $0xe8] sm:$0xf] }
  0xda   : > { %1550 = vmatpush.bf16.msrb.mxu0 %v2683_v15  ;;  %v3160_v15 = vld [vmem:[%s3653_s8 + $0x4ec] sm:$0xf0]  ;;  %v2539_v9 = vor.u32 %v3080_v2, %v2538_v1 }
  0xdb   : > { %1579 = vmatpush.bf16.msrb.mxu2 %v2611_v14  ;;  %v2858_v14 = vld [vmem:[%s3653_s8 + $0x4a0] sm:$0xf] }
  0xdc   : > { %1593 = vmatpush.bf16.msrb.mxu3 %v2615_v17  ;;  %1564 = vmatpush.bf16.msrb.mxu1 %v2687_v21  ;;  %v3008_v17 = vld [vmem:[%s3653_s8 + $0x34] sm:$0xf]  ;;  %v2859_v23 = vor.u32 %v3160_v15, %v2858_v14  ;;  %v3060_v14 = vld [vmem:[%s3653_s8 + $0x1cc] sm:$0xf0] }
  0xdd   : > { %v2860_v21 = vld [vmem:[%s3653_s8 + $0x4f0] sm:$0xf0] }
  0xde   : > { %1551 = vmatpush.bf16.msrb.mxu0 %v2603_v27  ;;  %v3121_v27 = vld [vmem:[%s3653_s8 + $0x3b4] sm:$0xf0]  ;;  %v2863_v30 = vor.u32 %v3150_v20, %v2860_v21  ;;  %v2459_v21 = vor.u32 %v3060_v14, %v2458_v13 }
  0xdf   : > { %1580 = vmatpush.bf16.msrb.mxu2 %v2531_v26  ;;  %v2287_v26 = vor.u32 %v3008_v17, %v2284_v18  ;;  %v2707_v35 = vor.u32 %v3121_v27, %v2706_v24  ;;  %v2388_v17 = vld [vmem:[%s3653_s8 + $0x138] sm:$0xf0]  ;;  %v3050_v18 = vld [vmem:[%s3653_s8 + $0x184] sm:$0xf]  ;;  %v3021_v24 = vld [vmem:[%s3653_s8 + $0x94] sm:$0xf0] }
  0xe0   : > { %1594 = vmatpush.bf16.msrb.mxu3 %v2535_v29  ;;  %1565 = vmatpush.bf16.msrb.mxu1 %v2607_v33  ;;  %v3140_v29 = vld [vmem:[%s3653_s8 + $0x44c] sm:$0xf0]  ;;  %v3130_v33 = vld [vmem:[%s3653_s8 + $0x404] sm:$0xf] }
  0xe1   : > { %v2779_v36 = vor.u32 %v3140_v29, %v2778_v28  ;;  %v2783_v42 = vor.u32 %v3130_v33, %v2780_v34  ;;  %v3011_v28 = vld [vmem:[%s3653_s8 + $0x4c] sm:$0xf]  ;;  %v2308_v29 = vld [vmem:[%s3653_s8 + $0x98] sm:$0xf0] }
  0xe2   : > { %1552 = vmatpush.bf16.msrb.mxu0 %v2523_v39  ;;  %v3101_v39 = vld [vmem:[%s3653_s8 + $0x314] sm:$0xf0]  ;;  %v2311_v34 = vor.u32 %v3011_v28, %v2308_v29 }
  0xe3   : > { %1581 = vmatpush.bf16.msrb.mxu2 %v2451_v38  ;;  %v2711_v38 = vor.u32 %v3111_v31, %v2708_v32  ;;  %v2627_v47 = vor.u32 %v3101_v39, %v2626_v37  ;;  %v2380_v31 = vld [vmem:[%s3653_s8 + $0x130] sm:$0xf0] }
  0xe4   : > { %1595 = vmatpush.bf16.msrb.mxu3 %v2455_v41  ;;  %1566 = vmatpush.bf16.msrb.mxu1 %v2527_v45  ;;  %v3120_v41 = vld [vmem:[%s3653_s8 + $0x3ac] sm:$0xf0]  ;;  %v3110_v45 = vld [vmem:[%s3653_s8 + $0x364] sm:$0xf]  ;;  %v2300_v39 = vld [vmem:[%s3653_s8 + $0x90] sm:$0xf0] }
  0xe5   : > { %v2699_v48 = vor.u32 %v3120_v41, %v2698_v40  ;;  %v2703_v54 = vor.u32 %v3110_v45, %v2700_v46 }
  0xe6   : > { %1553 = vmatpush.bf16.msrb.mxu0 %v2443_v51  ;;  %v3081_v51 = vld [vmem:[%s3653_s8 + $0x274] sm:$0xf0] }
  0xe7   : > { %1582 = vmatpush.bf16.msrb.mxu2 %v2371_v50  ;;  %v2631_v50 = vor.u32 %v3091_v43, %v2628_v44 }
  0xe8   : > { %1596 = vmatpush.bf16.msrb.mxu3 %v2375_v55  ;;  %1567 = vmatpush.bf16.msrb.mxu1 %v2447_v60  ;;  %v3071_v55 = vld [vmem:[%s3653_s8 + $0x22c] sm:$0xf]  ;;  %v2547_v60 = vor.u32 %v3081_v51, %v2546_v49 }
  0xe9   : > { %v2551_v63 = vor.u32 %v3071_v55, %v2548_v56 }
  0xea   : > { %1554 = vmatpush.bf16.msrb.mxu0 %v2363_v4  ;;  %v3051_v4 = vld [vmem:[%s3653_s8 + $0x18c] sm:$0xf] }
  0xeb   : > { %1583 = vmatpush.bf16.msrb.mxu2 %v2291_v3  ;;  %v2623_v3 = vor.u32 %v3090_v58, %v2620_v59 }
  0xec   : > { %1597 = vmatpush.bf16.msrb.mxu3 %v2295_v6  ;;  %1568 = vmatpush.bf16.msrb.mxu1 %v2367_v12  ;;  %v3070_v6 = vld [vmem:[%s3653_s8 + $0x224] sm:$0xf]  ;;  %v3041_v12 = vld [vmem:[%s3653_s8 + $0x134] sm:$0xf0] }
  0xed   : > { %v2387_v20 = vor.u32 %v3041_v12, %v2386_v10 }
  0xee   : > { %1584 = vmatmul.bf16.vlgmr.msrb.gmra.mxu2 %v3766_v57  ;;  %1555 = vmatpush.bf16.msrb.mxu0 %v2283_v19  ;;  %v2460_v19 = vld [vmem:[%s3653_s8 + $0x1d0] sm:$0xf0] }
  0xef   : > { %1632 = vmatpush.bf16.msra.mxu2 %v2867_v7  ;;  %1598 = vmatmul.bf16.vlgmr.msrb.gmra.mxu3 %v3766_v57  ;;  %v2540_v7 = vld [vmem:[%s3653_s8 + $0x270] sm:$0xf0]  ;;  %v2463_v27 = vor.u32 %v3050_v18, %v2460_v19 }
  0xf0   : > { %1646 = vmatpush.bf16.msra.mxu3 %v2871_v11  ;;  %1569 = vmatpush.bf16.msrb.mxu1 %v2287_v26  ;;  %v2471_v11 = vor.u32 %v3051_v4, %v2468_v5  ;;  %v2543_v15 = vor.u32 %v3070_v6, %v2540_v7  ;;  %v3040_v26 = vld [vmem:[%s3653_s8 + $0x12c] sm:$0xf0] }
  0xf1   : > { %1556 = vmatmul.bf16.vlgmr.msrb.gmra.mxu0 %v3766_v57 }
  0xf2   : > { %1604 = vmatpush.bf16.msra.mxu0 %v2859_v23  ;;  %v2391_v23 = vor.u32 %v3031_v16, %v2388_v17 }
  0xf3   : > { %1633 = vmatpush.bf16.msra.mxu2 %v2787_v22  ;;  %1570 = vmatmul.bf16.vlgmr.msrb.gmra.mxu1 %v3766_v57  ;;  %v2306_v22 = vld [vmem:[%s3653_s8 + $0x48] sm:$0xf] }
  0xf4   : > { %1647 = vmatpush.bf16.msra.mxu3 %v2791_v25  ;;  %1618 = vmatpush.bf16.msra.mxu1 %v2863_v30  ;;  %v2378_v25 = vld [vmem:[%s3653_s8 + $0xe0] sm:$0xf]  ;;  %v3030_v30 = vld [vmem:[%s3653_s8 + $0xe4] sm:$0xf]  ;;  %v2307_v32 = vor.u32 %v3021_v24, %v2306_v22 }
  0xf5   : > { %v2379_v33 = vor.u32 %v3040_v26, %v2378_v25  ;;  %v2383_v37 = vor.u32 %v3030_v30, %v2380_v31 }
  0xf6   : > { %1605 = vmatpush.bf16.msra.mxu0 %v2779_v36  ;;  %v3020_v36 = vld [vmem:[%s3653_s8 + $0x8c] sm:$0xf0] }
  0xf7   : > { %1634 = vmatpush.bf16.msra.mxu2 %v2707_v35  ;;  %v2298_v35 = vld [vmem:[%s3653_s8 + $0x40] sm:$0xf] }
  0xf8   : > { %1648 = vmatpush.bf16.msra.mxu3 %v2711_v38  ;;  %1619 = vmatpush.bf16.msra.mxu1 %v2783_v42  ;;  %v3010_v38 = vld [vmem:[%s3653_s8 + $0x44] sm:$0xf]  ;;  %v2299_v40 = vor.u32 %v3020_v36, %v2298_v35 }
  0xf9   : > { %v2303_v41 = vor.u32 %v3010_v38, %v2300_v39 }
  0xfa   : > { %1606 = vmatpush.bf16.msra.mxu0 %v2699_v48 }
  0xfb   : > { %1635 = vmatpush.bf16.msra.mxu2 %v2627_v47 }
  0xfc   : > { %1649 = vmatpush.bf16.msra.mxu3 %v2631_v50  ;;  %1620 = vmatpush.bf16.msra.mxu1 %v2703_v54 }
  0xfe   : > { %1607 = vmatpush.bf16.msra.mxu0 %v2619_v61 }
  0xff   : > { %1636 = vmatpush.bf16.msra.mxu2 %v2547_v60 }
 0x100   : > { %1650 = vmatpush.bf16.msra.mxu3 %v2551_v63  ;;  %1621 = vmatpush.bf16.msra.mxu1 %v2623_v3 }
 0x102   : > { %1608 = vmatpush.bf16.msra.mxu0 %v2539_v9 }
 0x103   : > { %1637 = vmatpush.bf16.msra.mxu2 %v2467_v8 }
 0x104   : > { %1651 = vmatpush.bf16.msra.mxu3 %v2471_v11  ;;  %1622 = vmatpush.bf16.msra.mxu1 %v2543_v15 }
 0x106   : > { %1609 = vmatpush.bf16.msra.mxu0 %v2459_v21 }
 0x107   : > { %1638 = vmatpush.bf16.msra.mxu2 %v2387_v20 }
 0x108   : > { %1652 = vmatpush.bf16.msra.mxu3 %v2391_v23  ;;  %1623 = vmatpush.bf16.msra.mxu1 %v2463_v27 }
 0x10a   : > { %1610 = vmatpush.bf16.msra.mxu0 %v2379_v33 }
 0x10b   : > { %1639 = vmatpush.bf16.msra.mxu2 %v2307_v32 }
 0x10c   : > { %1653 = vmatpush.bf16.msra.mxu3 %v2311_v34  ;;  %1624 = vmatpush.bf16.msra.mxu1 %v2383_v37 }
 0x10e   : > { %1640 = vmatmul.bf16.vlgmr.msra.gmra.mxu2 %v3766_v57  ;;  %1611 = vmatpush.bf16.msra.mxu0 %v2299_v40  ;;  %v1389_v42 = vpop.f32.mrf.mxu0  ;;  %v1403_v43 = vpop.f32.mrf.mxu1 }
 0x10f   : > { %1654 = vmatmul.bf16.vlgmr.msra.gmra.mxu3 %v3766_v57  ;;  %v1660_v44 = vpack.c.bf16 %v1403_v43, %v1389_v42 }
 0x110   : > { %1625 = vmatpush.bf16.msra.mxu1 %v2303_v41  ;;  %v3192_v41 = vld [vmem:[%s3677_s19 + $0x38] sm:$0xff] }
 0x111   : > { %1612 = vmatmul.bf16.vlgmr.msra.gmra.mxu0 %v3766_v57  ;;  %v1684_v45 = vrot.slane %v1660_v44, 4  ;;  %v3191_v44 = vld [vmem:[%s3677_s19 + $0x30] sm:$0xff] }
 0x112   : > { %v1431_v46 = vpop.f32.mrf.mxu3  ;;  %1888 = vmatpush.bf16.msrb.mxu0 %v3192_v41 }
 0x113   : > { %1626 = vmatmul.bf16.vlgmr.msra.gmra.mxu1 %v3766_v57  ;;  %v1417_v47 = vpop.f32.mrf.mxu2  ;;  %1688 = vst [vmem:[#allocation3 + $0x8] sm:$0xf] %v1684_v45 }
 0x114   : > { %v1661_v48 = vpack.c.bf16 %v1431_v46, %v1417_v47 }
 0x116   : > { %v1694_v49 = vrot.slane %v1661_v48, 4  ;;  %v1391_v50 = vpop.f32.mrf.mxu0  ;;  %v1405_v51 = vpop.f32.mrf.mxu1  ;;  %1889 = vmatpush.bf16.msrb.mxu0 %v3191_v44 }
 0x117   : > { %v3196_v52 = vpack.c.bf16 %v1391_v50, %v1389_v42  ;;  %v1670_v53 = vpack.c.bf16 %v1405_v51, %v1391_v50  ;;  %v3190_v51 = vld [vmem:[%s3677_s19 + $0x28] sm:$0xff] }
 0x118   : > { %1698 = vst [vmem:[#allocation3 + $0x18] sm:$0xf] %v1694_v49 }
 0x119   : > { %3197 = vst [vmem:[#allocation3] sm:$0xff] %v3196_v52   ;;  %v1685_v54 = vrot.slane %v1670_v53, 4 }
 0x11a   : > { %v1433_v56 = vpop.f32.mrf.mxu3  ;;  %1890 = vmatpush.bf16.msrb.mxu0 %v3190_v51 }
 0x11b   : > { %v1419_v55 = vpop.f32.mrf.mxu2  ;;  %1689 = vst [vmem:[#allocation3 + $0xc] sm:$0xf] %v1685_v54 }
 0x11c   : > { %v3201_v58 = vpack.c.bf16 %v1419_v55, %v1417_v47  ;;  %v1671_v59 = vpack.c.bf16 %v1433_v56, %v1419_v55  ;;  %v3189_v55 = vld [vmem:[%s3677_s19 + $0x20] sm:$0xff] }
 0x11e   : > { %3243 = vst [vmem:[#allocation3 + $0x10] sm:$0xff] %v3201_v58   ;;  %v1695_v60 = vrot.slane %v1671_v59, 4  ;;  %1891 = vmatpush.bf16.msrb.mxu0 %v3189_v55 }
 0x120   : > { %1699 = vst [vmem:[#allocation3 + $0x1c] sm:$0xf] %v1695_v60  ;;  %v3165_v40 = vld [vmem:[#allocation3] sm:$0xff] }
 0x122   : > { %v3166_v39 = vld [vmem:[#allocation3 + $0x8] sm:$0xff] }
 0x125   : > { %v3167_v36 = vld [vmem:[#allocation3 + $0x10] sm:$0xff] }
 0x127   : > { %v3168_v29 = vld [vmem:[#allocation3 + $0x18] sm:$0xff] }
 0x12e   : > { %v1445_v61 = vpop.f32.mrf.mxu0 }
 0x130   : > { %v1459_v62 = vpop.f32.mrf.mxu1 }
 0x131   : > { %v1662_v63 = vpack.c.bf16 %v1459_v62, %v1445_v61  ;;  %v1473_v0 = vpop.f32.mrf.mxu2  ;;  %v3188_v62 = vld [vmem:[%s3677_s19 + $0x18] sm:$0xff] }
 0x132   : > { %v1487_v1 = vpop.f32.mrf.mxu3  ;;  %1892 = vmatpush.bf16.msrb.mxu0 %v3188_v62 }
 0x133   : > { %v1704_v2 = vrot.slane %v1662_v63, 4  ;;  %v1663_v3 = vpack.c.bf16 %v1487_v1, %v1473_v0  ;;  %v3187_v1 = vld [vmem:[%s3677_s19 + $0x10] sm:$0xff] }
 0x135   : > { %1708 = vst [vmem:[#allocation3 + $0x28] sm:$0xf] %v1704_v2  ;;  %v1714_v4 = vrot.slane %v1663_v3, 4  ;;  %v3186_v2 = vld [vmem:[%s3677_s19 + $0x8] sm:$0xff] }
 0x136   : > { %v1447_v5 = vpop.f32.mrf.mxu0  ;;  %1893 = vmatpush.bf16.msrb.mxu0 %v3187_v1 }
 0x137   : > { %1718 = vst [vmem:[#allocation3 + $0x38] sm:$0xf] %v1714_v4  ;;  %v3206_v7 = vpack.c.bf16 %v1447_v5, %v1445_v61  ;;  %v3185_v4 = vld [vmem:[%s3677_s19] sm:$0xff] }
 0x138   : > { %v1461_v6 = vpop.f32.mrf.mxu1 }
 0x139   : > { %v1672_v8 = vpack.c.bf16 %v1461_v6, %v1447_v5  ;;  %v1475_v9 = vpop.f32.mrf.mxu2  ;;  %3244 = vst [vmem:[#allocation3 + $0x20] sm:$0xff] %v3206_v7   ;;  %v2906_v6 = vld [vmem:[%s4082_s0] sm:$0xf]  ;;  %v3163_v7 = vld [vmem:[%s4082_s0 + $0x8] sm:$0xf0] }
 0x13a   : > { %v3211_v10 = vpack.c.bf16 %v1475_v9, %v1473_v0  ;;  %v1489_v11 = vpop.f32.mrf.mxu3  ;;  %1894 = vmatpush.bf16.msrb.mxu0 %v3186_v2 }
 0x13b   : > { %v1705_v12 = vrot.slane %v1672_v8, 4  ;;  %v1673_v13 = vpack.c.bf16 %v1489_v11, %v1475_v9 }
 0x13c   : > { %3245 = vst [vmem:[#allocation3 + $0x30] sm:$0xff] %v3211_v10   ;;  %v2907_v10 = vor.u32 %v3163_v7, %v2906_v6 }
 0x13d   : > { %v1715_v14 = vrot.slane %v1673_v13, 4  ;;  %1709 = vst [vmem:[#allocation3 + $0x2c] sm:$0xf] %v1705_v12 }
 0x13e   : > { %1895 = vmatpush.bf16.msrb.mxu0 %v3185_v4 }
 0x13f   : > { %1719 = vst [vmem:[#allocation3 + $0x3c] sm:$0xf] %v1715_v14 }
 0x140   : > { %v3169_v22 = vld [vmem:[#allocation3 + $0x20] sm:$0xff] }
 0x141   : > { %1896 = vmatmul.bf16.vlgmr.msrb.gmra.mxu0 %v3766_v57 }
 0x143   : > { %v3171_v16 = vld [vmem:[#allocation3 + $0x30] sm:$0xff] }
 0x144   : > { %v3170_v17 = vld [vmem:[#allocation3 + $0x28] sm:$0xff] }
 0x146   : > { %v3172_v15 = vld [vmem:[#allocation3 + $0x38] sm:$0xff] }
 0x147   : > { %2041 = vmatpush.bf16.msrb.mxu1 %v3172_v15 }
 0x14b   : > { %2042 = vmatpush.bf16.msrb.mxu1 %v3171_v16 }
 0x14e   : > { %v1501_v18 = vpop.f32.mrf.mxu0 }
 0x14f   : > { %2043 = vmatpush.bf16.msrb.mxu1 %v3170_v17 }
 0x150   : > { %v1515_v21 = vpop.f32.mrf.mxu1 }
 0x151   : > { %v1529_v19 = vpop.f32.mrf.mxu2  ;;  %v1664_v24 = vpack.c.bf16 %v1515_v21, %v1501_v18 }
 0x152   : > { %v1543_v20 = vpop.f32.mrf.mxu3 }
 0x153   : > { %v1665_v23 = vpack.c.bf16 %v1543_v20, %v1529_v19  ;;  %v1724_v26 = vrot.slane %v1664_v24, 4  ;;  %2044 = vmatpush.bf16.msrb.mxu1 %v3169_v22 }
 0x155   : > { %v1734_v25 = vrot.slane %v1665_v23, 4  ;;  %1728 = vst [vmem:[#allocation3 + $0x48] sm:$0xf] %v1724_v26 }
 0x156   : > { %v1503_v27 = vpop.f32.mrf.mxu0 }
 0x157   : > { %1738 = vst [vmem:[#allocation3 + $0x58] sm:$0xf] %v1734_v25  ;;  %v3216_v28 = vpack.c.bf16 %v1503_v27, %v1501_v18  ;;  %2045 = vmatpush.bf16.msrb.mxu1 %v3168_v29 }
 0x158   : > { %v1517_v33 = vpop.f32.mrf.mxu1 }
 0x159   : > { %v1531_v30 = vpop.f32.mrf.mxu2  ;;  %3246 = vst [vmem:[#allocation3 + $0x40] sm:$0xff] %v3216_v28   ;;  %v1674_v35 = vpack.c.bf16 %v1517_v33, %v1503_v27 }
 0x15a   : > { %v3221_v31 = vpack.c.bf16 %v1531_v30, %v1529_v19  ;;  %v1545_v32 = vpop.f32.mrf.mxu3 }
 0x15b   : > { %v1675_v34 = vpack.c.bf16 %v1545_v32, %v1531_v30  ;;  %v1725_v38 = vrot.slane %v1674_v35, 4  ;;  %2046 = vmatpush.bf16.msrb.mxu1 %v3167_v36  ;;  %v2908_v32 = vld [vmem:[%s4082_s0 + $0xc] sm:$0xf0] }
 0x15c   : > { %3247 = vst [vmem:[#allocation3 + $0x50] sm:$0xff] %v3221_v31   ;;  %v3162_v31 = vld [vmem:[%s4082_s0 + $0x4] sm:$0xf] }
 0x15d   : > { %v1735_v37 = vrot.slane %v1675_v34, 4  ;;  %1729 = vst [vmem:[#allocation3 + $0x4c] sm:$0xf] %v1725_v38  ;;  %v2911_v35 = vor.u32 %v3162_v31, %v2908_v32  ;;  %v2914_v38 = vld [vmem:[%s4082_s0 + $0x8] sm:$0xf] }
 0x15f   : > { %1739 = vst [vmem:[#allocation3 + $0x5c] sm:$0xf] %v1735_v37  ;;  %2047 = vmatpush.bf16.msrb.mxu1 %v3166_v39  ;;  %v3164_v39 = vld [vmem:[%s4082_s0 + $0x10] sm:$0xf0] }
 0x160   : > { %v3173_v33 = vld [vmem:[#allocation3 + $0x40] sm:$0xff]  ;;  %v2915_v41 = vor.u32 %v3164_v39, %v2914_v38 }
 0x163   : > { %2048 = vmatpush.bf16.msrb.mxu1 %v3165_v40  ;;  %v3175_v29 = vld [vmem:[#allocation3 + $0x50] sm:$0xff] }
 0x164   : > { %v3174_v30 = vld [vmem:[#allocation3 + $0x48] sm:$0xff] }
 0x166   : > { %2049 = vmatmul.bf16.vlgmr.msrb.gmra.mxu1 %v2907_v10  ;;  %v3176_v23 = vld [vmem:[#allocation3 + $0x58] sm:$0xff] }
 0x16e   : > { %v1557_v42 = vpop.f32.mrf.mxu0 }
 0x170   : > { %v1571_v46 = vpop.f32.mrf.mxu1 }
 0x171   : > { %v1585_v43 = vpop.f32.mrf.mxu2  ;;  %v1666_v48 = vpack.c.bf16 %v1571_v46, %v1557_v42 }
 0x172   : > { %v1599_v45 = vpop.f32.mrf.mxu3 }
 0x173   : > { %v1667_v47 = vpack.c.bf16 %v1599_v45, %v1585_v43  ;;  %v1744_v50 = vrot.slane %v1666_v48, 4  ;;  %v3311_v48 = vld [vmem:[%s341_s26] ss:$0 sm:$0xff] }
 0x175   : > { %v1754_v49 = vrot.slane %v1667_v47, 4  ;;  %1748 = vst [vmem:[#allocation3 + $0x68] sm:$0xf] %v1744_v50 }
 0x176   : > { %v1559_v52 = vpop.f32.mrf.mxu0 }
 0x177   : > { %1758 = vst [vmem:[#allocation3 + $0x78] sm:$0xf] %v1754_v49  ;;  %v3226_v53 = vpack.c.bf16 %v1559_v52, %v1557_v42 }
 0x178   : > { %v1573_v59 = vpop.f32.mrf.mxu1 }
 0x179   : > { %v1587_v54 = vpop.f32.mrf.mxu2  ;;  %3248 = vst [vmem:[#allocation3 + $0x60] sm:$0xff] %v3226_v53   ;;  %v1676_v61 = vpack.c.bf16 %v1573_v59, %v1559_v52 }
 0x17a   : > { %v3231_v56 = vpack.c.bf16 %v1587_v54, %v1585_v43  ;;  %v1601_v58 = vpop.f32.mrf.mxu3 }
 0x17b   : > { %v1677_v60 = vpack.c.bf16 %v1601_v58, %v1587_v54  ;;  %v1745_v0 = vrot.slane %v1676_v61, 4 }
 0x17c   : > { %3249 = vst [vmem:[#allocation3 + $0x70] sm:$0xff] %v3231_v56  }
 0x17d   : > { %v1755_v63 = vrot.slane %v1677_v60, 4  ;;  %1749 = vst [vmem:[#allocation3 + $0x6c] sm:$0xf] %v1745_v0 }
 0x17f   : > { %1759 = vst [vmem:[#allocation3 + $0x7c] sm:$0xf] %v1755_v63 }
 0x180   : > { %v3177_v18 = vld [vmem:[#allocation3 + $0x60] sm:$0xff] }
 0x183   : > { %v3179_v5 = vld [vmem:[#allocation3 + $0x70] sm:$0xff] }
 0x184   : > { %v3178_v9 = vld [vmem:[#allocation3 + $0x68] sm:$0xff] }
 0x186   : > { %v3180_v3 = vld [vmem:[#allocation3 + $0x78] sm:$0xff] }
 0x187   : > { %2055 = vmatpush.bf16.msrb.mxu2 %v3180_v3 }
 0x18b   : > { %2056 = vmatpush.bf16.msrb.mxu2 %v3179_v5 }
 0x18e   : > { %v1613_v8 = vpop.f32.mrf.mxu0 }
 0x18f   : > { %2057 = vmatpush.bf16.msrb.mxu2 %v3178_v9 }
 0x190   : > { %v1627_v11 = vpop.f32.mrf.mxu1 }
 0x191   : > { %v1641_v12 = vpop.f32.mrf.mxu2  ;;  %v1668_v13 = vpack.c.bf16 %v1627_v11, %v1613_v8 }
 0x192   : > { %v1655_v14 = vpop.f32.mrf.mxu3 }
 0x193   : > { %v1669_v15 = vpack.c.bf16 %v1655_v14, %v1641_v12  ;;  %v1764_v16 = vrot.slane %v1668_v13, 4  ;;  %2058 = vmatpush.bf16.msrb.mxu2 %v3177_v18 }
 0x195   : > { %v1774_v17 = vrot.slane %v1669_v15, 4  ;;  %1768 = vst [vmem:[#allocation3 + $0x88] sm:$0xf] %v1764_v16 }
 0x196   : > { %v1615_v19 = vpop.f32.mrf.mxu0 }
 0x197   : > { %1778 = vst [vmem:[#allocation3 + $0x98] sm:$0xf] %v1774_v17  ;;  %v3236_v20 = vpack.c.bf16 %v1615_v19, %v1613_v8  ;;  %2059 = vmatpush.bf16.msrb.mxu2 %v3176_v23 }
 0x198   : > { %v1629_v21 = vpop.f32.mrf.mxu1 }
 0x199   : > { %v1643_v22 = vpop.f32.mrf.mxu2  ;;  %3250 = vst [vmem:[#allocation3 + $0x80] sm:$0xff] %v3236_v20   ;;  %v1678_v24 = vpack.c.bf16 %v1629_v21, %v1615_v19 }
 0x19a   : > { %v3241_v25 = vpack.c.bf16 %v1643_v22, %v1641_v12  ;;  %v1657_v57 = vpop.f32.mrf.mxu3 }
 0x19b   : > { %v1679_v26 = vpack.c.bf16 %v1657_v57, %v1643_v22  ;;  %v1765_v27 = vrot.slane %v1678_v24, 4  ;;  %2060 = vmatpush.bf16.msrb.mxu2 %v3175_v29 }
 0x19c   : > { %3251 = vst [vmem:[#allocation3 + $0x90] sm:$0xff] %v3241_v25  }
 0x19d   : > { %v1775_v28 = vrot.slane %v1679_v26, 4  ;;  %1769 = vst [vmem:[#allocation3 + $0x8c] sm:$0xf] %v1765_v27 }
 0x19f   : > { %1779 = vst [vmem:[#allocation3 + $0x9c] sm:$0xf] %v1775_v28  ;;  %2061 = vmatpush.bf16.msrb.mxu2 %v3174_v30 }
 0x1a0   : > { %v3181_v40 = vld [vmem:[#allocation3 + $0x80] sm:$0xff] }
 0x1a3   : > { %2062 = vmatpush.bf16.msrb.mxu2 %v3173_v33  ;;  %v3183_v36 = vld [vmem:[#allocation3 + $0x90] sm:$0xff] }
 0x1a4   : > { %v3182_v37 = vld [vmem:[#allocation3 + $0x88] sm:$0xff] }
 0x1a6   : > { %v3184_v34 = vld [vmem:[#allocation3 + $0x98] sm:$0xff]  ;;  %2063 = vmatmul.bf16.vlgmr.msrb.gmra.mxu2 %v2911_v35 }
 0x1a7   : > { %2073 = vmatpush.bf16.msrb.mxu3 %v3184_v34 }
 0x1ab   : > { %2074 = vmatpush.bf16.msrb.mxu3 %v3183_v36 }
 0x1af   : > { %2075 = vmatpush.bf16.msrb.mxu3 %v3182_v37 }
 0x1b3   : > { %2076 = vmatpush.bf16.msrb.mxu3 %v3181_v40 }
 0x1b6   : > { %2996 = vmatmul.msk.bf16.vlgmr.msrb.gmra.mxu3 %vm2037_vm0, %v2915_v41 }
 0x1be   : > { %v1897_v42 = vpop.f32.mrf.mxu0 }
 0x1c6   : > { %v1899_v47 = vpop.f32.mrf.mxu0 }
 0x1e3   : > { %v2050_v43 = vpop.f32.mrf.mxu1 }
 0x1e4   : > { %v2051_v44 = vadd.f32 %v2050_v43, %v1897_v42 }
 0x1eb   : > { %v2052_v49 = vpop.f32.mrf.mxu1 }
 0x1ec   : > { %v2053_v52 = vadd.f32 %v2052_v49, %v1899_v47 }
 0x229   : > { %v2064_v45 = vpop.f32.mrf.mxu2 }
 0x22a   : > { %v2065_v46 = vadd.f32 %v2064_v45, %v2051_v44 }
 0x231   : > { %v2066_v54 = vpop.f32.mrf.mxu2 }
 0x232   : > { %v2067_v55 = vadd.f32 %v2066_v54, %v2053_v52 }
 0x239   : > { %v2078_v50 = vpop.f32.mrf.mxu3 }
 0x23a   : > { %v2079_v51 = vadd.f32 %v2078_v50, %v2065_v46 }
 0x23c   : > { %v2087_v53 = vadd.f32 %v3311_v48, %v2079_v51 }
 0x240   : > { %2092 = sbr.rel (%p2997_p7) target bundleno = 591 (0x24f), region = 72 }
 0x241   : > { %v2080_v56 = vpop.f32.mrf.mxu3 }
 0x242   : > { %v2081_v58 = vadd.f32 %v2080_v56, %v2067_v55 }
 0x244   : > { %v2088_v59 = vadd.f32 %v3311_v48, %v2081_v58 }
 0x245   : > { %v3312_v60 = vld [vmem:[%s350_s13] ss:$0 sm:$0xff] }
 0x246   : > { %v3313_v61 = vld [vmem:[%s359_s22] ss:$0 sm:$0xff]  ;;  %v2097_v62 = vmul.f32 %v3312_v60, %v2087_v53  ;;  %v2098_v63 = vmul.f32 %v3312_v60, %v2088_v59 }
 0x248   : > { %v2103_v0 = vadd.f32 %v3313_v61, %v2097_v62  ;;  %v2104_v1 = vadd.f32 %v3313_v61, %v2098_v63 }
 0x24a   : > { %vm2105_vm1 = vcmp.gt.f32.partialorder %v2103_v0, 0.0  ;;  %v2107_v2 = vmul.f32 0.01, %v2103_v0  ;;  %vm2106_vm2 = vcmp.gt.f32.partialorder %v2104_v1, 0.0  ;;  %v2108_v3 = vmul.f32 0.01, %v2104_v1 }
 0x24c   : > { %v2109_v4 = vsel %vm2105_vm1, %v2103_v0, %v2107_v2  ;;  %v2110_v5 = vsel %vm2106_vm2, %v2104_v1, %v2108_v3 }
 0x24d   : > { %2111 = vst [vmem:[#allocation2] sm:$0xff] %v2109_v4 }
 0x24e   : > { %2112 = vst [vmem:[#allocation2 + $0x8] sm:$0xff] %v2110_v5 }
 0x24f PF: > { %p2998_p5 = scmp.ne.s32.totalorder %s3539_s28, 2 }
 0x251   : > { %2116 = sbr.rel (%p2998_p5) target bundleno = 600 (0x258), region = 76 }
 0x256   : > { %2117 = vst [vmem:[%s4089_s7] sm:$0xff] %v2087_v53 }
 0x257   : > { %2118 = vst [vmem:[%s4089_s7 + $0x8] sm:$0xff] %v2088_v59 }
 0x258 PF: > { %s4098_s19 = sld [smem:[#allocation14_spill]]  ;;  %p23_p9 = scmp.ge.s32.totalorder %s3542_s29, 5  }
 0x259   : > { %s4099_s26 = sld [smem:[#allocation15_spill]]  ;;  %s4100_s24 = smov %s3468_s25 }
 0x25a   : > { %s4102_s27 = smov %s3542_s29  ;;  %25 = sbr.rel (!%p23_p9) target bundleno = 9 (0x9), region = 136 }
 0x25e   : > { %s4101_s25 = smov %s4098_s19 }
 0x25f   :  { %2130 = vsyncpa [#allocation5], 1 }
 0x260   :  { %2132 = vsyncpa [#allocation5 + $0x1], 1 }
 0x261   :  { %2133 = vsyncpa [#allocation7], 1 }
 0x262   :  { %2135 = vsyncpa [#allocation7 + $0x1], 1 }
 0x263   :  { %2136 = vsyncpa [#allocation10], 1 }
 0x264   :  { %2138 = vsyncpa [#allocation10 + $0x1], 1 }

</bundles_post_ra>
